<compile_context>
chip_gen: v6e
topology: v6e:2x2x1
jax: 0.10.0
libtpu: 0.0.40
codegen_flags: <defaults>
</compile_context>

<pallas_src>
import functools

import jax
import jax.numpy as jnp
import numpy as np
from jax.experimental import pallas as pl
from jax.experimental.pallas import tpu as pltpu

_KIN = 384          # 363 real features + 1 bias lane + 20 zero pad lanes
_BIAS_LANE = 363
_NOUT = 128         # q head zero-padded from 6 -> 128 output lanes
_MIN_TILE = 128


def _round_up(n, m):
    return (n + m - 1) // m * m


def dqn_kernel(xp_ref, mconv_ref, w1_ref, b1_ref, w2_ref, b2_ref,
               wq_ref, bq_ref, out_ref):
    # Conv2d(3,1,2,pad=1) + bias + flatten as a single MXU matmul against the
    # precomputed (384, 144) matrix (bias rides on the constant-1.0 lane).
    x = xp_ref[...]                                               # (TB, 384) bf16
    h0 = jnp.maximum(
        jnp.dot(x, mconv_ref[...], preferred_element_type=jnp.float32), 0.0)

    # fc1 + relu
    h1 = jnp.maximum(
        jnp.dot(h0.astype(jnp.bfloat16), w1_ref[...],
                preferred_element_type=jnp.float32) + b1_ref[...], 0.0)
    # fc2 + relu
    h2 = jnp.maximum(
        jnp.dot(h1.astype(jnp.bfloat16), w2_ref[...],
                preferred_element_type=jnp.float32) + b2_ref[...], 0.0)

    # Dueling heads folded into one matmul: q = h2 @ (w3 + wv) + (b3 + bv),
    # zero-padded to 128 output lanes for a lane-dense, unmasked store.
    out_ref[...] = (jnp.dot(h2.astype(jnp.bfloat16), wq_ref[...],
                            preferred_element_type=jnp.float32) + bq_ref[...])


def prepare_params(params):
    """One-time weight-side precompute: conv->matmul fold against the raw
    363-feature input (bias folded into a constant lane), dueling-head merge,
    128-lane head padding, bf16 casts."""
    wc = params["w_conv"]                                      # (1, 3, 2, 2)
    mconv = jnp.zeros((_KIN, 144), jnp.float32)
    ii = np.arange(12)[:, None]                                # conv output row
    jj = np.arange(12)[None, :]                                # conv output col
    cols = (ii * 12 + jj).reshape(-1)
    for c in range(3):
        for di in range(2):
            for dj in range(2):
                si = ii + di - 1                               # raw input row
                sj = jj + dj - 1                               # raw input col
                valid = (si >= 0) & (si <= 10) & (sj >= 0) & (sj <= 10)
                rows = (c * 121 + np.clip(si, 0, 10) * 11
                        + np.clip(sj, 0, 10)).reshape(-1)
                vals = wc[0, c, di, dj] * valid.reshape(-1).astype(np.float32)
                mconv = mconv.at[rows, cols].add(vals)
    # Conv bias folded onto the constant-1.0 input lane.
    mconv = mconv.at[_BIAS_LANE, :].set(params["b_conv"][0])

    wq = params["w3"] + params["wv"]                           # (512, 6)
    bq = params["b3"] + params["bv"]                           # (1, 6)
    wq = jnp.pad(wq, ((0, 0), (0, _NOUT - 6)))                 # (512, 128)
    bq = jnp.pad(bq, ((0, 0), (0, _NOUT - 6)))                 # (1, 128)
    return {
        "mconv": mconv.astype(jnp.bfloat16),
        "w1": params["w1"].astype(jnp.bfloat16),
        "b1": params["b1"].astype(jnp.float32),
        "w2": params["w2"].astype(jnp.bfloat16),
        "b2": params["b2"].astype(jnp.float32),
        "wq": wq.astype(jnp.bfloat16),
        "bq": bq.astype(jnp.float32),
    }


def _has_two_tensorcores():
    """True on chips with 2 TensorCores sharing a grid (v7x / v4 / v5p)."""
    try:
        kind = jax.devices()[0].device_kind.lower()
    except Exception:
        return False
    return any(tag in kind for tag in ("v7", "v4", "v5p", "v5 p"))


def _pick_tiles(batch, tb):
    need = _round_up(max(batch, 1), _MIN_TILE)
    tb = _round_up(max(_MIN_TILE, min(tb, need)), _MIN_TILE)
    # On 2-TC chips make sure dimension_semantics=("parallel",) has >= 2 grid
    # steps to shard; only when each half still keeps a decent MXU tile.
    if _has_two_tensorcores() and need >= 2 * _MIN_TILE and need <= tb:
        tb = _round_up(pl.cdiv(need, 2), _MIN_TILE)
    bp = _round_up(need, tb)
    return tb, bp


@functools.partial(jax.jit, static_argnames=("tb",))
def dqn_forward(x, prep, tb=1024):
    """x: (B, 3, 11, 11) float32 NCHW -> q: (B, 6) float32."""
    B = x.shape[0]
    assert x.shape[1:] == (3, 11, 11)

    tb, bp = _pick_tiles(B, tb)

    # Raw flattened features + constant 1.0 bias lane, padded to 384 lanes, bf16.
    ones = jnp.ones((B, 1), x.dtype)
    xflat = jnp.concatenate([x.reshape(B, 3 * 11 * 11), ones], axis=1)  # (B, 364)
    xflat = jnp.pad(xflat, ((0, bp - B), (0, _KIN - 364))).astype(jnp.bfloat16)

    const = lambda shape: pl.BlockSpec(shape, lambda i: (0, 0))

    # Explicit VMEM budget from the tile math (with headroom).  Needed because
    # the v5e scoped-VMEM default is only 16 MiB and TB defaults above 512.
    weight_bytes = ((_KIN * 144 + 144 * 512 + 512 * 512 + 512 * _NOUT) * 2
                    + (512 + 512 + _NOUT) * 4)
    vmem_bytes = (2 * tb * _KIN * 2                      # bf16 input, 2 buffers
                  + 2 * tb * _NOUT * 4                   # f32 output, 2 buffers
                  + 2 * weight_bytes                     # weight pipeline buffers
                  + tb * (144 + 512 + 512 + _NOUT) * 4   # f32 intermediates
                  + tb * (144 + 512 + 512) * 2           # bf16 recasts
                  + (8 << 20))                           # compiler scratch/headroom
    vmem_bytes = int(min(vmem_bytes, 48 << 20))

    flops = 2 * bp * (_KIN * 144 + 144 * 512 + 512 * 512 + 512 * _NOUT)
    bytes_accessed = bp * (_KIN * 2 + _NOUT * 4) + weight_bytes

    q = pl.pallas_call(
        dqn_kernel,
        out_shape=jax.ShapeDtypeStruct((bp, _NOUT), jnp.float32),
        grid=(bp // tb,),
        in_specs=[
            pl.BlockSpec((tb, _KIN), lambda i: (i, 0)),         # activation stream
            const((_KIN, 144)),                                 # conv-as-matmul (+bias)
            const((144, 512)), const((1, 512)),                 # fc1
            const((512, 512)), const((1, 512)),                 # fc2
            const((512, _NOUT)), const((1, _NOUT)),             # merged dueling head
        ],
        out_specs=pl.BlockSpec((tb, _NOUT), lambda i: (i, 0)),
        compiler_params=pltpu.CompilerParams(
            dimension_semantics=("parallel",),
            vmem_limit_bytes=vmem_bytes),
        cost_estimate=pl.CostEstimate(
            flops=flops, transcendentals=0, bytes_accessed=bytes_accessed),
    )(xflat, prep["mconv"],
      prep["w1"], prep["b1"], prep["w2"], prep["b2"],
      prep["wq"], prep["bq"])
    return q[:B, :6]


def init_params(key):
    """Deterministic PyTorch-style (uniform +-1/sqrt(fan_in)) init."""
    ks = jax.random.split(key, 10)

    def u(k, shape, fan_in):
        bound = 1.0 / float(fan_in) ** 0.5
        return jax.random.uniform(k, shape, jnp.float32, -bound, bound)

    return {
        "w_conv": u(ks[0], (1, 3, 2, 2), 3 * 2 * 2),
        "b_conv": u(ks[1], (1,), 3 * 2 * 2),
        "w1": u(ks[2], (144, 512), 144),
        "b1": u(ks[3], (1, 512), 144),
        "w2": u(ks[4], (512, 512), 512),
        "b2": u(ks[5], (1, 512), 512),
        "w3": u(ks[6], (512, 6), 512),
        "b3": u(ks[7], (1, 6), 512),
        "wv": u(ks[8], (512, 1), 512),
        "bv": u(ks[9], (1, 1), 512),
    }


def dqn_reference(x, params):
    """Pure-JAX f32 reference matching the PyTorch forward (for validation)."""
    conv = jax.lax.conv_general_dilated(
        x, params["w_conv"], window_strides=(1, 1), padding=((1, 1), (1, 1)),
        dimension_numbers=("NCHW", "OIHW", "NCHW"))
    conv = conv + params["b_conv"].reshape(1, 1, 1, 1)
    h = jnp.maximum(conv, 0.0)                                 # (B, 1, 12, 12)
    hflat = h.reshape(x.shape[0], 12 * 12)                     # (B, 144)
    h1 = jnp.maximum(hflat @ params["w1"] + params["b1"], 0.0)
    h2 = jnp.maximum(h1 @ params["w2"] + params["b2"], 0.0)
    a = h2 @ params["w3"] + params["b3"]
    v = h2 @ params["wv"] + params["bv"]
    return v + a


if __name__ == "__main__":
    key = jax.random.PRNGKey(0)
    kx, kp = jax.random.split(key)
    # Board is 11x11 (fc1 expects 144 = 12*12 post-conv features), 3 channels.
    x = jax.random.normal(kx, (2, 3, 11, 11), jnp.float32)
    params = init_params(kp)
    prep = prepare_params(params)

    q = dqn_forward(x, prep)
    jax.block_until_ready(q)

    q_ref = dqn_reference(x, params)
    assert q.shape == (2, 6)
    # Kernel uses bf16 matmul inputs with f32 accumulation; compare against the
    # pure-f32 reference with a bf16-appropriate tolerance.
    assert jnp.allclose(q, q_ref, atol=2e-2, rtol=2e-2), "mismatch vs reference"
    print("KERNEL_OK")
</pallas_src>

<mosaic_0001>
module attributes {stable_mosaic.version = 11 : i64} {
  func.func @dqn_kernel(%arg0: i32, %arg1: memref<128x384xbf16, #tpu.memory_space<vmem>>, %arg2: memref<384x144xbf16, #tpu.memory_space<vmem>>, %arg3: memref<144x512xbf16, #tpu.memory_space<vmem>>, %arg4: memref<1x512xf32, #tpu.memory_space<vmem>>, %arg5: memref<512x512xbf16, #tpu.memory_space<vmem>>, %arg6: memref<1x512xf32, #tpu.memory_space<vmem>>, %arg7: memref<512x128xbf16, #tpu.memory_space<vmem>>, %arg8: memref<1x128xf32, #tpu.memory_space<vmem>>, %arg9: memref<128x128xf32, #tpu.memory_space<vmem>>) attributes {dimension_semantics = [#tpu.dimension_semantics<parallel>], iteration_bounds = array<i64: 1>, scalar_prefetch = 0 : i64, scratch_operands = 0 : i64, tpu.core_type = #tpu.core_type<tc>, window_params = [{transform_indices = @transform_0, window_bounds = array<i64: 128, 384>}, {pipeline_mode = #tpu.pipeline_mode<synchronous>, transform_indices = @transform_1, window_bounds = array<i64: 384, 144>}, {pipeline_mode = #tpu.pipeline_mode<synchronous>, transform_indices = @transform_2, window_bounds = array<i64: 144, 512>}, {pipeline_mode = #tpu.pipeline_mode<synchronous>, transform_indices = @transform_3, window_bounds = array<i64: 1, 512>}, {pipeline_mode = #tpu.pipeline_mode<synchronous>, transform_indices = @transform_4, window_bounds = array<i64: 512, 512>}, {pipeline_mode = #tpu.pipeline_mode<synchronous>, transform_indices = @transform_5, window_bounds = array<i64: 1, 512>}, {pipeline_mode = #tpu.pipeline_mode<synchronous>, transform_indices = @transform_6, window_bounds = array<i64: 512, 128>}, {pipeline_mode = #tpu.pipeline_mode<synchronous>, transform_indices = @transform_7, window_bounds = array<i64: 1, 128>}, {transform_indices = @transform_8, window_bounds = array<i64: 128, 128>}]} {
    %c0 = arith.constant 0 : index
    %c0_0 = arith.constant 0 : index
    %0 = vector.load %arg1[%c0, %c0_0] : memref<128x384xbf16, #tpu.memory_space<vmem>>, vector<128x384xbf16>
    %c0_1 = arith.constant 0 : index
    %c0_2 = arith.constant 0 : index
    %1 = vector.load %arg2[%c0_1, %c0_2] : memref<384x144xbf16, #tpu.memory_space<vmem>>, vector<384x144xbf16>
    %cst = arith.constant dense<0.000000e+00> : vector<128x144xf32>
    %2 = tpu.matmul %0, %1, %cst {dimension_numbers = #tpu.dot_dimension_numbers<[1], [0], [0], [1], [0, 0, 1, 1], [], []>} : vector<128x384xbf16>, vector<384x144xbf16>, vector<128x144xf32> -> vector<128x144xf32>
    %cst_3 = arith.constant 0.000000e+00 : f32
    %3 = vector.broadcast %cst_3 : f32 to vector<128x144xf32>
    %4 = arith.maximumf %2, %3 : vector<128x144xf32>
    %5 = arith.truncf %4 : vector<128x144xf32> to vector<128x144xbf16>
    %c0_4 = arith.constant 0 : index
    %c0_5 = arith.constant 0 : index
    %6 = vector.load %arg3[%c0_4, %c0_5] : memref<144x512xbf16, #tpu.memory_space<vmem>>, vector<144x512xbf16>
    %cst_6 = arith.constant dense<0.000000e+00> : vector<128x512xf32>
    %7 = tpu.matmul %5, %6, %cst_6 {dimension_numbers = #tpu.dot_dimension_numbers<[1], [0], [0], [1], [0, 0, 1, 1], [], []>} : vector<128x144xbf16>, vector<144x512xbf16>, vector<128x512xf32> -> vector<128x512xf32>
    %c0_7 = arith.constant 0 : index
    %c0_8 = arith.constant 0 : index
    %8 = vector.load %arg4[%c0_7, %c0_8] : memref<1x512xf32, #tpu.memory_space<vmem>>, vector<1x512xf32>
    %9 = vector.broadcast %8 : vector<1x512xf32> to vector<128x512xf32>
    %10 = arith.addf %7, %9 : vector<128x512xf32>
    %cst_9 = arith.constant 0.000000e+00 : f32
    %11 = vector.broadcast %cst_9 : f32 to vector<128x512xf32>
    %12 = arith.maximumf %10, %11 : vector<128x512xf32>
    %13 = arith.truncf %12 : vector<128x512xf32> to vector<128x512xbf16>
    %c0_10 = arith.constant 0 : index
    %c0_11 = arith.constant 0 : index
    %14 = vector.load %arg5[%c0_10, %c0_11] : memref<512x512xbf16, #tpu.memory_space<vmem>>, vector<512x512xbf16>
    %cst_12 = arith.constant dense<0.000000e+00> : vector<128x512xf32>
    %15 = tpu.matmul %13, %14, %cst_12 {dimension_numbers = #tpu.dot_dimension_numbers<[1], [0], [0], [1], [0, 0, 1, 1], [], []>} : vector<128x512xbf16>, vector<512x512xbf16>, vector<128x512xf32> -> vector<128x512xf32>
    %c0_13 = arith.constant 0 : index
    %c0_14 = arith.constant 0 : index
    %16 = vector.load %arg6[%c0_13, %c0_14] : memref<1x512xf32, #tpu.memory_space<vmem>>, vector<1x512xf32>
    %17 = vector.broadcast %16 : vector<1x512xf32> to vector<128x512xf32>
    %18 = arith.addf %15, %17 : vector<128x512xf32>
    %cst_15 = arith.constant 0.000000e+00 : f32
    %19 = vector.broadcast %cst_15 : f32 to vector<128x512xf32>
    %20 = arith.maximumf %18, %19 : vector<128x512xf32>
    %21 = arith.truncf %20 : vector<128x512xf32> to vector<128x512xbf16>
    %c0_16 = arith.constant 0 : index
    %c0_17 = arith.constant 0 : index
    %22 = vector.load %arg7[%c0_16, %c0_17] : memref<512x128xbf16, #tpu.memory_space<vmem>>, vector<512x128xbf16>
    %cst_18 = arith.constant dense<0.000000e+00> : vector<128x128xf32>
    %23 = tpu.matmul %21, %22, %cst_18 {dimension_numbers = #tpu.dot_dimension_numbers<[1], [0], [0], [1], [0, 0, 1, 1], [], []>} : vector<128x512xbf16>, vector<512x128xbf16>, vector<128x128xf32> -> vector<128x128xf32>
    %c0_19 = arith.constant 0 : index
    %c0_20 = arith.constant 0 : index
    %24 = vector.load %arg8[%c0_19, %c0_20] : memref<1x128xf32, #tpu.memory_space<vmem>>, vector<1x128xf32>
    %25 = vector.broadcast %24 : vector<1x128xf32> to vector<128x128xf32>
    %26 = arith.addf %23, %25 : vector<128x128xf32>
    %c0_21 = arith.constant 0 : index
    %c0_22 = arith.constant 0 : index
    %27 = vector.load %arg9[%c0_21, %c0_22] : memref<128x128xf32, #tpu.memory_space<vmem>>, vector<128x128xf32>
    tpu.vector_store %arg9[%c0_21, %c0_22], %26 {strides = array<i32>} : memref<128x128xf32, #tpu.memory_space<vmem>>, vector<128x128xf32>,
    return
  }
  func.func @transform_0(%arg0: i32) -> (i32, i32) {
    %c0_i32 = arith.constant 0 : i32
    %c0_i32_0 = arith.constant 0 : i32
    return %arg0, %c0_i32 : i32, i32
  }
  func.func @transform_1(%arg0: i32) -> (i32, i32) {
    %c0_i32 = arith.constant 0 : i32
    %c0_i32_0 = arith.constant 0 : i32
    %c0_i32_1 = arith.constant 0 : i32
    return %c0_i32, %c0_i32_0 : i32, i32
  }
  func.func @transform_2(%arg0: i32) -> (i32, i32) {
    %c0_i32 = arith.constant 0 : i32
    %c0_i32_0 = arith.constant 0 : i32
    %c0_i32_1 = arith.constant 0 : i32
    return %c0_i32, %c0_i32_0 : i32, i32
  }
  func.func @transform_3(%arg0: i32) -> (i32, i32) {
    %c0_i32 = arith.constant 0 : i32
    %c0_i32_0 = arith.constant 0 : i32
    %c0_i32_1 = arith.constant 0 : i32
    return %c0_i32, %c0_i32_0 : i32, i32
  }
  func.func @transform_4(%arg0: i32) -> (i32, i32) {
    %c0_i32 = arith.constant 0 : i32
    %c0_i32_0 = arith.constant 0 : i32
    %c0_i32_1 = arith.constant 0 : i32
    return %c0_i32, %c0_i32_0 : i32, i32
  }
  func.func @transform_5(%arg0: i32) -> (i32, i32) {
    %c0_i32 = arith.constant 0 : i32
    %c0_i32_0 = arith.constant 0 : i32
    %c0_i32_1 = arith.constant 0 : i32
    return %c0_i32, %c0_i32_0 : i32, i32
  }
  func.func @transform_6(%arg0: i32) -> (i32, i32) {
    %c0_i32 = arith.constant 0 : i32
    %c0_i32_0 = arith.constant 0 : i32
    %c0_i32_1 = arith.constant 0 : i32
    return %c0_i32, %c0_i32_0 : i32, i32
  }
  func.func @transform_7(%arg0: i32) -> (i32, i32) {
    %c0_i32 = arith.constant 0 : i32
    %c0_i32_0 = arith.constant 0 : i32
    %c0_i32_1 = arith.constant 0 : i32
    return %c0_i32, %c0_i32_0 : i32, i32
  }
  func.func @transform_8(%arg0: i32) -> (i32, i32) {
    %c0_i32 = arith.constant 0 : i32
    %c0_i32_0 = arith.constant 0 : i32
    return %arg0, %c0_i32 : i32, i32
  }
}

</mosaic_0001>

<bundles_post_ra>
// kernel: dqn_forward.1
= control target key start
LH: loop header
LB: loop body
LE: loop exit
PB: predicated region body
PF: predicated region fallthrough
CT: control target
= control target key end

     0   :  { %13 = vsyncpa [#allocation3], 0  ;;  %s5236_s0 = inlined_call_operand.vmem [shape: bf16[128,384], index: 0, kind: input, shape index: {}]   ;;  %s5237_s1 = inlined_call_operand.vmem [shape: bf16[384,144], index: 1, kind: input, shape index: {}]   ;;  %s5238_s2 = inlined_call_operand.hbm [shape: bf16[144,512], index: 2, kind: input, shape index: {}]   ;;  %s5239_s3 = inlined_call_operand.vmem [shape: f32[1,512], index: 3, kind: input, shape index: {}]   ;;  %s5240_s4 = inlined_call_operand.vmem [shape: bf16[512,512], index: 4, kind: input, shape index: {}]   ;;  %s5241_s5 = inlined_call_operand.vmem [shape: f32[1,512], index: 5, kind: input, shape index: {}]   ;;  %s5242_s6 = inlined_call_operand.hbm [shape: bf16[512,128], index: 6, kind: input, shape index: {}]   ;;  %s5243_s7 = inlined_call_operand.vmem [shape: f32[1,128], index: 7, kind: input, shape index: {}]   ;;  %s5244_s8 = inlined_call_operand.vmem [shape: f32[128,128], index: 8, kind: output, shape index: {}]  }
   0x1   :  { %14 = vsyncpa [#allocation5], 0  ;;  %s4044_s27 = smov [#allocation2]  }
   0x2   :  { %s24_s28 = sshll.u32 %s4044_s27, 4  ;;  %s25_s28 = int_to_ptr.vmem [resolvable:$true] %s24_s28 }
   0x3   :  { %s4008_s29 = scalar_lea.vmem %s25_s28, 4608  ;;  %p4013_p1 = scmp.lt.s32.totalorder %s25_s28, %s25_s28 }
   0x4   :  { %p4009_p0 = scmp.ne.s32.totalorder %s25_s28, %s4008_s29  ;;  %p4014_p2 = scmp.lt.s32.totalorder %s4008_s29, %s4008_s29 }
   0x6   :  { %p4015_p3 = por %p4014_p2, %p4013_p1 }
   0x8   :  { %p4016_p4 = pnand %p4015_p3, %p4009_p0 }
   0xa   :  { %4019 = shalt.err (!%p4016_p4)
}
   0xb   :  { %s4045_s30 = smov 256   ;;  %s4046_s9 = smov 16  }
   0xc   :  { %30 = dma.hbm_to_vmem [thread:$0]  %s5238_s2, 4608, %s25_s28, [#allocation3], %s4045_s30, %s4045_s30, %s4046_s9  }
   0xd   :  { %s4047_s12 = smov [#allocation4]  }
   0xe   :  { %s42_s13 = sshll.u32 %s4047_s12, 4  ;;  %s43_s13 = int_to_ptr.vmem [resolvable:$true] %s42_s13 }
   0xf   :  { %s4028_s14 = scalar_lea.vmem %s43_s13, 4096  ;;  %p4033_p6 = scmp.lt.s32.totalorder %s43_s13, %s43_s13 }
  0x10   :  { %p4029_p5 = scmp.ne.s32.totalorder %s43_s13, %s4028_s14  ;;  %p4034_p7 = scmp.lt.s32.totalorder %s4028_s14, %s4028_s14 }
  0x12   :  { %p4035_p8 = por %p4034_p7, %p4033_p6 }
  0x14   :  { %p4036_p9 = pnand %p4035_p8, %p4029_p5 }
  0x16   :  { %4039 = shalt.err (!%p4036_p9)
}
  0x17   :  { %s4048_s15 = smov 64   ;;  %s4049_s16 = smov 4  }
  0x18   :  { %48 = dma.hbm_to_vmem [thread:$0]  %s5242_s6, 4096, %s43_s13, [#allocation5], %s4048_s15, %s4048_s15, %s4049_s16  }
  0x19   :  { %4040 = dma.done.wait [#allocation3], 4608  }
  0x1a   :  { %4041 = vsyncadd [#allocation3], 4294962688 }
  0x1b   :  { %4042 = dma.done.wait [#allocation5], 4096  }
  0x1c   :  { %4043 = vsyncadd [#allocation5], 4294963200  ;;  %v4050_v0 = vmov 0   ;;  %v3618_v1 = vld [vmem:[%s5237_s1 + $0x74] ss:$8 sps:$4 sm:$0xff]   ;;  %vm1018_vm0 = vcmask 130048  }
  0x1d   :  { %651 = vmatprep.mubr.bf16.mxu1 %v4050_v0  ;;  %v3620_v2 = vld [vmem:[%s5237_s1 + $0x70] ss:$8 sps:$4 sm:$0xff]   ;;  %506 = vmatprep.subr.bf16.mxu0 %v3618_v1  ;;  %v3621_v3 = vld [vmem:[%s5237_s1 + $0x64] ss:$8 sps:$4 sm:$0xff]   ;;  %v3623_v4 = vld [vmem:[%s5237_s1 + $0x60] ss:$8 sps:$4 sm:$0xff]  }
  0x1e   :  { %507 = vmatpush1.bf16.msra.mxu0 %v3620_v2  ;;  %v3624_v5 = vld [vmem:[%s5237_s1 + $0x54] ss:$8 sps:$4 sm:$0xff]   ;;  %v3626_v6 = vld [vmem:[%s5237_s1 + $0x50] ss:$8 sps:$4 sm:$0xff]   ;;  %v3627_v7 = vld [vmem:[%s5237_s1 + $0x44] ss:$8 sps:$4 sm:$0xff]  }
  0x1f   :  { %508 = vmatprep.subr.bf16.mxu0 %v3621_v3  ;;  %v3639_v8 = vld [vmem:[%s5237_s1 + $0x174] ss:$8 sps:$4 sm:$0xff]   ;;  %v3641_v9 = vld [vmem:[%s5237_s1 + $0x170] ss:$8 sps:$4 sm:$0xff]   ;;  %v3629_v10 = vld [vmem:[%s5237_s1 + $0x40] ss:$8 sps:$4 sm:$0xff]  }
  0x20   :  { %v3630_v11 = vld [vmem:[%s5237_s1 + $0x34] ss:$8 sps:$4 sm:$0xff]   ;;  %619 = vmatprep.subr.bf16.mxu1 %v3639_v8  ;;  %v3645_v12 = vld [vmem:[%s5237_s1 + $0x164] ss:$8 sps:$4 sm:$0xff]   ;;  %v3647_v13 = vld [vmem:[%s5237_s1 + $0x160] ss:$8 sps:$4 sm:$0xff]  }
  0x21   :  { %620 = vmatpush1.bf16.msra.mxu1 %v3641_v9  ;;  %v3632_v14 = vld [vmem:[%s5237_s1 + $0x30] ss:$8 sps:$4 sm:$0xff]   ;;  %v3651_v15 = vld [vmem:[%s5237_s1 + $0x154] ss:$8 sps:$4 sm:$0xff]   ;;  %v3633_v16 = vld [vmem:[%s5237_s1 + $0x24] ss:$8 sps:$4 sm:$0xff]  }
  0x22   :  { %509 = vmatpush1.bf16.msra.mxu0 %v3623_v4  ;;  %621 = vmatprep.subr.bf16.mxu1 %v3645_v12  ;;  %v3653_v17 = vld [vmem:[%s5237_s1 + $0x150] ss:$8 sps:$4 sm:$0xff]   ;;  %v3657_v18 = vld [vmem:[%s5237_s1 + $0x144] ss:$8 sps:$4 sm:$0xff]   ;;  %v3635_v19 = vld [vmem:[%s5237_s1 + $0x20] ss:$8 sps:$4 sm:$0xff]  }
  0x23   :  { %510 = vmatprep.subr.bf16.mxu0 %v3624_v5  ;;  %v3636_v20 = vld [vmem:[%s5237_s1 + $0x14] ss:$8 sps:$4 sm:$0xff]   ;;  %v3659_v21 = vld [vmem:[%s5237_s1 + $0x140] ss:$8 sps:$4 sm:$0xff]   ;;  %v3638_v23 = vld [vmem:[%s5237_s1 + $0x10] ss:$8 sps:$4 sm:$0xff]  }
  0x24   :  { %v3663_v22 = vld [vmem:[%s5237_s1 + $0x134] ss:$8 sps:$4 sm:$0xff]   ;;  %v3642_v24 = vld [vmem:[%s5237_s1 + $0x4] ss:$8 sps:$4 sm:$0xff]   ;;  %v3665_v25 = vld [vmem:[%s5237_s1 + $0x130] ss:$8 sps:$4 sm:$0xff]  }
  0x25   :  { %622 = vmatpush1.bf16.msra.mxu1 %v3647_v13  ;;  %v3669_v26 = vld [vmem:[%s5237_s1 + $0x124] ss:$8 sps:$4 sm:$0xff]   ;;  %v3644_v27 = vld [vmem:[%s5237_s1] ss:$8 sps:$4 sm:$0xff]   ;;  %v3648_v28 = vld [vmem:[%s5237_s1 + $0xf4] ss:$8 sps:$4 sm:$0xff]  }
  0x26   :  { %511 = vmatpush1.bf16.msra.mxu0 %v3626_v6  ;;  %623 = vmatprep.subr.bf16.mxu1 %v3651_v15  ;;  %v3671_v29 = vld [vmem:[%s5237_s1 + $0x120] ss:$8 sps:$4 sm:$0xff]   ;;  %v3675_v30 = vld [vmem:[%s5237_s1 + $0x114] ss:$8 sps:$4 sm:$0xff]   ;;  %v3650_v31 = vld [vmem:[%s5237_s1 + $0xf0] ss:$8 sps:$4 sm:$0xff]  }
  0x27   :  { %512 = vmatprep.subr.bf16.mxu0 %v3627_v7  ;;  %v3654_v32 = vld [vmem:[%s5237_s1 + $0xe4] ss:$8 sps:$4 sm:$0xff]   ;;  %v3677_v33 = vld [vmem:[%s5237_s1 + $0x110] ss:$8 sps:$4 sm:$0xff]   ;;  %v3656_v36 = vld [vmem:[%s5237_s1 + $0xe0] ss:$8 sps:$4 sm:$0xff]  }
  0x28   :  { %v3681_v34 = vld [vmem:[%s5237_s1 + $0x104] ss:$8 sps:$4 sm:$0xff]   ;;  %v3660_v37 = vld [vmem:[%s5237_s1 + $0xd4] ss:$8 sps:$4 sm:$0xff]   ;;  %v3683_v38 = vld [vmem:[%s5237_s1 + $0x100] ss:$8 sps:$4 sm:$0xff]  }
  0x29   :  { %624 = vmatpush1.bf16.msra.mxu1 %v3653_v17  ;;  %v3693_v35 = vld [vmem:[%s5236_s0 + $0x4] ss:$12 sps:$4 sm:$0xff]   ;;  %v3687_v41 = vld [vmem:[%s5236_s0 + $0x8] ss:$12 sps:$4 sm:$0xff]   ;;  %v3694_v46 = vld [vmem:[%s5236_s0 + $0x20] ss:$12 sps:$4 sm:$0xff]  }
  0x2a   :  { %513 = vmatpush1.bf16.msra.mxu0 %v3629_v10  ;;  %625 = vmatprep.subr.bf16.mxu1 %v3657_v18  ;;  %v3662_v39 = vld [vmem:[%s5237_s1 + $0xd0] ss:$8 sps:$4 sm:$0xff]   ;;  %v3666_v40 = vld [vmem:[%s5237_s1 + $0xc4] ss:$8 sps:$4 sm:$0xff]   ;;  %v3668_v42 = vld [vmem:[%s5237_s1 + $0xc0] ss:$8 sps:$4 sm:$0xff]  }
  0x2b   :  { %514 = vmatprep.subr.bf16.mxu0 %v3630_v11  ;;  %538 = vmatprep.mubr.bf16.mxu0 %v3693_v35  ;;  %v3672_v43 = vld [vmem:[%s5237_s1 + $0xb4] ss:$8 sps:$4 sm:$0xff]   ;;  %v3674_v44 = vld [vmem:[%s5237_s1 + $0xb0] ss:$8 sps:$4 sm:$0xff]   ;;  %v3678_v45 = vld [vmem:[%s5237_s1 + $0xa4] ss:$8 sps:$4 sm:$0xff]  }
  0x2c   :  { %v3680_v47 = vld [vmem:[%s5237_s1 + $0xa0] ss:$8 sps:$4 sm:$0xff]   ;;  %v3724_v49 = vld [vmem:[#allocation2 + $0xe4] ss:$16 sps:$4 sm:$0xff]   ;;  %v3686_v53 = vld [vmem:[%s5237_s1 + $0x90] ss:$8 sps:$4 sm:$0xff]  }
  0x2d   :  { %626 = vmatpush1.bf16.msra.mxu1 %v3659_v21  ;;  %v3722_v48 = vld [vmem:[#allocation2 + $0xe0] ss:$16 sps:$4 sm:$0xff]   ;;  %v3684_v50 = vld [vmem:[%s5237_s1 + $0x94] ss:$8 sps:$4 sm:$0xff]   ;;  %v3688_v54 = vld [vmem:[%s5237_s1 + $0x84] ss:$8 sps:$4 sm:$0xff]  }
  0x2e   :  { %515 = vmatpush1.bf16.msra.mxu0 %v3632_v14  ;;  %627 = vmatprep.subr.bf16.mxu1 %v3663_v22  ;;  %v3728_v51 = vld [vmem:[#allocation2 + $0xc0] ss:$16 sps:$4 sm:$0xff]   ;;  %v3730_v52 = vld [vmem:[#allocation2 + $0xc4] ss:$16 sps:$4 sm:$0xff]   ;;  %v3727_v60 = vld [vmem:[#allocation2 + $0xec] ss:$16 sps:$4 sm:$0xff]  }
  0x2f   :  { %516 = vmatprep.subr.bf16.mxu0 %v3633_v16  ;;  %v3698_v55 = vld [vmem:[%s5236_s0 + $0x38] ss:$12 sps:$4 sm:$0xff]   ;;  %v3734_v57 = vld [vmem:[#allocation2 + $0xa0] ss:$16 sps:$4 sm:$0xff]   ;;  %v3695_v62 = vld [vmem:[%s5236_s0 + $0x1c] ss:$12 sps:$4 sm:$0xff]  }
  0x30   :  { %v3736_v56 = vld [vmem:[#allocation2 + $0xa4] ss:$16 sps:$4 sm:$0xff]   ;;  %v3690_v58 = vld [vmem:[%s5237_s1 + $0x80] ss:$8 sps:$4 sm:$0xff]   ;;  %v3702_v1 = vld [vmem:[%s5236_s0 + $0x50] ss:$12 sps:$4 sm:$0xff]  }
  0x31   :  { %628 = vmatpush1.bf16.msra.mxu1 %v3665_v25  ;;  %v3742_v59 = vld [vmem:[#allocation2 + $0x84] ss:$16 sps:$4 sm:$0xff]   ;;  %v3691_v61 = vld [vmem:[%s5236_s0] ss:$12 sps:$4 sm:$0xff]   ;;  %v3725_v2 = vld [vmem:[#allocation2 + $0xe8] ss:$16 sps:$4 sm:$0xff]  }
  0x32   :  { %517 = vmatpush1.bf16.msra.mxu0 %v3635_v19  ;;  %629 = vmatprep.subr.bf16.mxu1 %v3669_v26  ;;  %v3740_v63 = vld [vmem:[#allocation2 + $0x80] ss:$16 sps:$4 sm:$0xff]   ;;  %v3733_v3 = vld [vmem:[#allocation2 + $0xcc] ss:$16 sps:$4 sm:$0xff]   ;;  %v3748_v4 = vld [vmem:[#allocation2 + $0x64] ss:$16 sps:$4 sm:$0xff]  }
  0x33   :  { %518 = vmatprep.subr.bf16.mxu0 %v3636_v20  ;;  %v3731_v5 = vld [vmem:[#allocation2 + $0xc8] ss:$16 sps:$4 sm:$0xff]   ;;  %v3746_v6 = vld [vmem:[#allocation2 + $0x60] ss:$16 sps:$4 sm:$0xff]   ;;  %v3739_v7 = vld [vmem:[#allocation2 + $0xac] ss:$16 sps:$4 sm:$0xff]  }
  0x34   :  { %v3754_v8 = vld [vmem:[#allocation2 + $0x44] ss:$16 sps:$4 sm:$0xff]   ;;  %v3752_v10 = vld [vmem:[#allocation2 + $0x40] ss:$16 sps:$4 sm:$0xff]   ;;  %v3737_v12 = vld [vmem:[#allocation2 + $0xa8] ss:$16 sps:$4 sm:$0xff]  }
  0x35   :  { %630 = vmatpush1.bf16.msra.mxu1 %v3671_v29  ;;  %v3697_v9 = vld [vmem:[%s5236_s0 + $0x18] ss:$12 sps:$4 sm:$0xff]   ;;  %v3699_v11 = vld [vmem:[%s5236_s0 + $0x34] ss:$12 sps:$4 sm:$0xff]   ;;  %v3745_v14 = vld [vmem:[#allocation2 + $0x8c] ss:$16 sps:$4 sm:$0xff]  }
  0x36   :  { %519 = vmatpush1.bf16.msra.mxu0 %v3638_v23  ;;  %631 = vmatprep.subr.bf16.mxu1 %v3675_v30  ;;  %v3706_v13 = vld [vmem:[%s5236_s0 + $0x68] ss:$12 sps:$4 sm:$0xff]   ;;  %v3758_v16 = vld [vmem:[#allocation2 + $0x20] ss:$16 sps:$4 sm:$0xff]   ;;  %v3751_v18 = vld [vmem:[#allocation2 + $0x6c] ss:$16 sps:$4 sm:$0xff]  }
  0x37   :  { %520 = vmatprep.subr.bf16.mxu0 %v3642_v24  ;;  %v3760_v15 = vld [vmem:[#allocation2 + $0x24] ss:$16 sps:$4 sm:$0xff]   ;;  %v3743_v17 = vld [vmem:[#allocation2 + $0x88] ss:$16 sps:$4 sm:$0xff]   ;;  %v3701_v19 = vld [vmem:[%s5236_s0 + $0x30] ss:$12 sps:$4 sm:$0xff]  }
  0x38   :  { %v3703_v20 = vld [vmem:[%s5236_s0 + $0x4c] ss:$12 sps:$4 sm:$0xff]   ;;  %v3705_v25 = vld [vmem:[%s5236_s0 + $0x48] ss:$12 sps:$4 sm:$0xff]   ;;  %v3707_v26 = vld [vmem:[%s5236_s0 + $0x64] ss:$12 sps:$4 sm:$0xff]  }
  0x39   :  { %632 = vmatpush1.bf16.msra.mxu1 %v3677_v33  ;;  %v3749_v21 = vld [vmem:[#allocation2 + $0x68] ss:$16 sps:$4 sm:$0xff]   ;;  %v3710_v22 = vld [vmem:[%s5236_s0 + $0x80] ss:$12 sps:$4 sm:$0xff]   ;;  %v3718_v30 = vld [vmem:[%s5236_s0 + $0xb0] ss:$12 sps:$4 sm:$0xff]  }
  0x3a   :  { %521 = vmatpush1.bf16.msra.mxu0 %v3644_v27  ;;  %633 = vmatprep.subr.bf16.mxu1 %v3681_v34  ;;  %v3757_v23 = vld [vmem:[#allocation2 + $0x4c] ss:$16 sps:$4 sm:$0xff]   ;;  %v3755_v24 = vld [vmem:[#allocation2 + $0x48] ss:$16 sps:$4 sm:$0xff]  }
  0x3b   :  { %522 = vmatprep.subr.bf16.mxu0 %v3648_v28  ;;  %v3714_v27 = vld [vmem:[%s5236_s0 + $0x98] ss:$12 sps:$4 sm:$0xff]   ;;  %v3709_v28 = vld [vmem:[%s5236_s0 + $0x60] ss:$12 sps:$4 sm:$0xff]   ;;  %v3711_v29 = vld [vmem:[%s5236_s0 + $0x7c] ss:$12 sps:$4 sm:$0xff]  }
  0x3c   :  { %v3761_v33 = vld [vmem:[#allocation2 + $0x28] ss:$16 sps:$4 sm:$0xff]   ;;  %v3763_v34 = vld [vmem:[#allocation2 + $0x2c] ss:$16 sps:$4 sm:$0xff]  }
  0x3d   :  { %634 = vmatpush1.bf16.msra.mxu1 %v3683_v38  ;;  %v3719_v35 = vld [vmem:[%s5236_s0 + $0xac] ss:$12 sps:$4 sm:$0xff]   ;;  %v3721_v38 = vld [vmem:[%s5236_s0 + $0xa8] ss:$12 sps:$4 sm:$0xff]  }
  0x3e   :  { %523 = vmatpush2.bf16.msra.mxu0 %v3650_v31  ;;  %1043 = vmatprep.subr.bf16.mxu1 %v3724_v49  ;;  %v3713_v31 = vld [vmem:[%s5236_s0 + $0x78] ss:$12 sps:$4 sm:$0xff]  }
  0x3f   :  { %524 = vmatprep.subr.bf16.mxu0 %v3654_v32  ;;  %v3715_v32 = vld [vmem:[%s5236_s0 + $0x94] ss:$12 sps:$4 sm:$0xff]  }
  0x40   :  { %652 = vmatmul.mubr.bf16.vlgmr.msra.gmra.mxu1 %v3687_v41  ;;  %v3772_v41 = vld [vmem:[#allocation2 + $0x104] ss:$16 sps:$4 sm:$0xff]  }
  0x41   :  { %661 = vmatprep.mubr.bf16.mxu1 %v4050_v0  ;;  %1044 = vmatpush1.bf16.msra.mxu1 %v3722_v48 }
  0x42   :  { %525 = vmatpush2.bf16.msra.mxu0 %v3656_v36  ;;  %1045 = vmatprep.subr.bf16.mxu1 %v3730_v52  ;;  %v3764_v36 = vld [vmem:[#allocation2] ss:$16 sps:$4 sm:$0xff]  }
  0x43   :  { %526 = vmatprep.subr.bf16.mxu0 %v3660_v37  ;;  %v3766_v37 = vld [vmem:[#allocation2 + $0x4] ss:$16 sps:$4 sm:$0xff]  }
  0x45   :  { %1046 = vmatpush1.bf16.msra.mxu1 %v3728_v51 }
  0x46   :  { %527 = vmatpush2.bf16.msra.mxu0 %v3662_v39  ;;  %1047 = vmatprep.subr.bf16.mxu1 %v3736_v56  ;;  %v3767_v39 = vld [vmem:[#allocation2 + $0x8] ss:$16 sps:$4 sm:$0xff]  }
  0x47   :  { %528 = vmatprep.subr.bf16.mxu0 %v3666_v40  ;;  %v3769_v40 = vld [vmem:[#allocation2 + $0xc] ss:$16 sps:$4 sm:$0xff]  }
  0x48   :  { %662 = vmatmul.mubr.bf16.gmra.mxu1 %v3694_v46  ;;  %v3781_v46 = vld [vmem:[%s5240_s4 + $0x2e4] ss:$16 sps:$4 sm:$0xff]  }
  0x49   :  { %671 = vmatprep.mubr.bf16.mxu1 %v4050_v0  ;;  %1048 = vmatpush1.bf16.msra.mxu1 %v3734_v57 }
  0x4a   :  { %529 = vmatpush2.bf16.msra.mxu0 %v3668_v42  ;;  %1049 = vmatprep.subr.bf16.mxu1 %v3742_v59  ;;  %v3775_v42 = vld [vmem:[#allocation2 + $0x10c] ss:$16 sps:$4 sm:$0xff]  }
  0x4b   :  { %530 = vmatprep.subr.bf16.mxu0 %v3672_v43  ;;  %v3770_v43 = vld [vmem:[#allocation2 + $0x100] ss:$16 sps:$4 sm:$0xff]  }
  0x4d   :  { %1050 = vmatpush1.bf16.msra.mxu1 %v3740_v63 }
  0x4e   :  { %531 = vmatpush2.bf16.msra.mxu0 %v3674_v44  ;;  %1051 = vmatprep.subr.bf16.mxu1 %v3748_v4  ;;  %v3773_v44 = vld [vmem:[#allocation2 + $0x108] ss:$16 sps:$4 sm:$0xff]  }
  0x4f   :  { %532 = vmatprep.subr.bf16.mxu0 %v3678_v45  ;;  %v3778_v45 = vld [vmem:[%s5240_s4 + $0xe4] ss:$16 sps:$4 sm:$0xff]  }
  0x50   :  { %672 = vmatmul.mubr.bf16.gmra.mxu1 %v3698_v55 }
  0x51   :  { %681 = vmatprep.mubr.bf16.mxu1 %v4050_v0  ;;  %1052 = vmatpush1.bf16.msra.mxu1 %v3746_v6 }
  0x52   :  { %533 = vmatpush2.bf16.msra.mxu0 %v3680_v47  ;;  %1053 = vmatprep.subr.bf16.mxu1 %v3754_v8 }
  0x53   :  { %534 = vmatprep.subr.bf16.mxu0 %v3684_v50 }
  0x55   :  { %1054 = vmatpush1.bf16.msra.mxu1 %v3752_v10 }
  0x56   :  { %535 = vmatpush2.bf16.msra.mxu0 %v3686_v53  ;;  %1055 = vmatprep.subr.bf16.mxu1 %v3760_v15 }
  0x57   :  { %536 = vmatprep.subr.bf16.mxu0 %v3688_v54 }
  0x58   :  { %682 = vmatmul.mubr.bf16.gmra.mxu1 %v3702_v1 }
  0x59   :  { %691 = vmatprep.mubr.bf16.mxu1 %v4050_v0  ;;  %1056 = vmatpush1.bf16.msra.mxu1 %v3758_v16  ;;  %v3776_v16 = vld [vmem:[%s5240_s4 + $0xe0] ss:$16 sps:$4 sm:$0xff]  }
  0x5a   :  { %537 = vmatpush2.bf16.msra.mxu0 %v3690_v58  ;;  %1057 = vmatprep.subr.bf16.mxu1 %v3766_v37 }
  0x5b   :  { %1156 = vmatprep.subr.bf16.mxu0 %v3727_v60 }
  0x5d   :  { %539 = vmatmul.mubr.bf16.vlgmr.msra.gmra.mxu0 %v3691_v61  ;;  %1058 = vmatpush1.bf16.msra.mxu1 %v3764_v36 }
  0x5e   :  { %548 = vmatprep.mubr.bf16.mxu0 %v3695_v62  ;;  %1157 = vmatpush1.bf16.msra.mxu0 %v3725_v2 }
  0x5f   :  { %1158 = vmatprep.subr.bf16.mxu0 %v3733_v3  ;;  %1073 = vmatprep.subr.bf16.mxu1 %v3772_v41  ;;  %v3788_v41 = vld [vmem:[%s5240_s4 + $0xa0] ss:$16 sps:$4 sm:$0xff]  }
  0x60   :  { %692 = vmatmul.mubr.bf16.gmra.mxu1 %v3706_v13 }
  0x61   :  { %701 = vmatprep.mubr.bf16.mxu1 %v4050_v0  ;;  %1074 = vmatpush2.bf16.msra.mxu1 %v3770_v43 }
  0x62   :  { %1159 = vmatpush1.bf16.msra.mxu0 %v3731_v5  ;;  %2155 = vmatprep.subr.bf16.mxu1 %v3778_v45  ;;  %v3796_v45 = vld [vmem:[%s5240_s4 + $0x84] ss:$16 sps:$4 sm:$0xff]  }
  0x63   :  { %1160 = vmatprep.subr.bf16.mxu0 %v3739_v7 }
  0x65   :  { %549 = vmatmul.mubr.bf16.gmra.mxu0 %v3697_v9 }
  0x66   :  { %558 = vmatprep.mubr.bf16.mxu0 %v3699_v11  ;;  %1161 = vmatpush1.bf16.msra.mxu0 %v3737_v12 }
  0x67   :  { %1162 = vmatprep.subr.bf16.mxu0 %v3745_v14 }
  0x68   :  { %702 = vmatmul.mubr.bf16.gmra.mxu1 %v3710_v22  ;;  %v3787_v22 = vld [vmem:[%s5240_s4 + $0x2c4] ss:$16 sps:$4 sm:$0xff]  }
  0x69   :  { %711 = vmatprep.mubr.bf16.mxu1 %v4050_v0 }
  0x6a   :  { %1163 = vmatpush1.bf16.msra.mxu0 %v3743_v17  ;;  %v3779_v17 = vld [vmem:[%s5240_s4 + $0x2e0] ss:$16 sps:$4 sm:$0xff]  }
  0x6b   :  { %1164 = vmatprep.subr.bf16.mxu0 %v3751_v18 }
  0x6d   :  { %559 = vmatmul.mubr.bf16.gmra.mxu0 %v3701_v19 }
  0x6e   :  { %568 = vmatprep.mubr.bf16.mxu0 %v3703_v20  ;;  %1165 = vmatpush1.bf16.msra.mxu0 %v3749_v21  ;;  %v3784_v21 = vld [vmem:[%s5240_s4 + $0xc4] ss:$16 sps:$4 sm:$0xff]  }
  0x6f   :  { %1166 = vmatprep.subr.bf16.mxu0 %v3757_v23 }
  0x70   :  { %712 = vmatmul.mubr.bf16.gmra.mxu1 %v3714_v27 }
  0x71   :  { %721 = vmatprep.mubr.bf16.mxu1 %v4050_v0  ;;  %v3717_v0 = vld [vmem:[%s5236_s0 + $0x90] ss:$12 sps:$4 sm:$0xff]  }
  0x72   :  { %1167 = vmatpush1.bf16.msra.mxu0 %v3755_v24 }
  0x73   :  { %1168 = vmatprep.subr.bf16.mxu0 %v3763_v34  ;;  %v3793_v34 = vld [vmem:[%s5240_s4 + $0x2a4] ss:$16 sps:$4 sm:$0xff]  }
  0x75   :  { %569 = vmatmul.mubr.bf16.gmra.mxu0 %v3705_v25 }
  0x76   :  { %578 = vmatprep.mubr.bf16.mxu0 %v3707_v26  ;;  %1169 = vmatpush1.bf16.msra.mxu0 %v3761_v33  ;;  %v3790_v33 = vld [vmem:[%s5240_s4 + $0xa4] ss:$16 sps:$4 sm:$0xff]  }
  0x77   :  { %1170 = vmatprep.subr.bf16.mxu0 %v3769_v40 }
  0x78   :  { %722 = vmatmul.mubr.bf16.gmra.mxu1 %v3718_v30  ;;  %v3785_v30 = vld [vmem:[%s5240_s4 + $0x2c0] ss:$16 sps:$4 sm:$0xff]  }
  0x7a   :  { %1171 = vmatpush1.bf16.msra.mxu0 %v3767_v39 }
  0x7b   :  { %1186 = vmatprep.subr.bf16.mxu0 %v3775_v42  ;;  %v3791_v42 = vld [vmem:[%s5240_s4 + $0x2a0] ss:$16 sps:$4 sm:$0xff]  }
  0x7d   :  { %579 = vmatmul.mubr.bf16.gmra.mxu0 %v3709_v28 }
  0x7e   :  { %588 = vmatprep.mubr.bf16.mxu0 %v3711_v29  ;;  %1187 = vmatpush2.bf16.msra.mxu0 %v3773_v44  ;;  %v3782_v29 = vld [vmem:[%s5240_s4 + $0xc0] ss:$16 sps:$4 sm:$0xff]  }
  0x7f   :  { %2268 = vmatprep.subr.bf16.mxu0 %v3781_v46  ;;  %v3799_v46 = vld [vmem:[%s5240_s4 + $0x284] ss:$16 sps:$4 sm:$0xff]  }
  0x85   :  { %589 = vmatmul.mubr.bf16.gmra.mxu0 %v3713_v31 }
  0x86   :  { %598 = vmatprep.mubr.bf16.mxu0 %v3715_v32 }
  0x8d   :  { %599 = vmatmul.mubr.bf16.gmra.mxu0 %v3717_v0 }
  0x8e   :  { %608 = vmatprep.mubr.bf16.mxu0 %v3719_v35 }
  0x95   :  { %609 = vmatmul.mubr.bf16.gmra.mxu0 %v3721_v38 }
 0x100   :  { %v653_v47 = vpop.f32.mrf.mxu1 }
 0x102   :  { %v655_v48 = vpop.f32.mrf.mxu1 }
 0x104   :  { %v657_v49 = vpop.f32.mrf.mxu1 }
 0x106   :  { %v659_v50 = vpop.f32.mrf.mxu1 }
 0x108   :  { %v663_v51 = vpop.f32.mrf.mxu1 }
 0x10a   :  { %v665_v52 = vpop.f32.mrf.mxu1 }
 0x10c   :  { %v667_v53 = vpop.f32.mrf.mxu1 }
 0x10e   :  { %v669_v54 = vpop.f32.mrf.mxu1 }
 0x110   :  { %v4332_v55 = vpop.f32.mrf.mxu1 }
 0x112   :  { %v4334_v56 = vpop.f32.mrf.mxu1 }
 0x114   :  { %v4336_v57 = vpop.f32.mrf.mxu1 }
 0x116   :  { %v4338_v59 = vpop.f32.mrf.mxu1 }
 0x118   :  { %v4340_v61 = vpop.f32.mrf.mxu1 }
 0x11a   :  { %v4342_v63 = vpop.f32.mrf.mxu1 }
 0x11c   :  { %v4344_v5 = vpop.f32.mrf.mxu1 }
 0x11d   :  { %v540_v58 = vpop.f32.mrf.mxu0 }
 0x11e   :  { %v654_v3 = vadd.f32 %v653_v47, %v540_v58  ;;  %v4346_v9 = vpop.f32.mrf.mxu1  ;;  %v3805_v58 = vld [vmem:[%s5240_s4 + $0x264] ss:$16 sps:$4 sm:$0xff]  }
 0x11f   :  { %v542_v60 = vpop.f32.mrf.mxu0 }
 0x120   :  { %v656_v1 = vadd.f32 %v655_v48, %v542_v60  ;;  %v732_v12 = vmax.f32 %v654_v3, 0.0  ;;  %v4348_v14 = vpop.f32.mrf.mxu1 }
 0x121   :  { %v544_v62 = vpop.f32.mrf.mxu0 }
 0x122   :  { %v658_v2 = vadd.f32 %v657_v49, %v544_v62  ;;  %v733_v10 = vmax.f32 %v656_v1, 0.0  ;;  %v4356_v20 = vpop.f32.mrf.mxu1 }
 0x123   :  { %v546_v4 = vpop.f32.mrf.mxu0 }
 0x124   :  { %v660_v6 = vadd.f32 %v659_v50, %v546_v4  ;;  %v734_v7 = vmax.f32 %v658_v2, 0.0  ;;  %v4366_v27 = vpop.f32.mrf.mxu1  ;;  %v3800_v4 = vld [vmem:[%s5240_s4 + $0x60] ss:$16 sps:$4 sm:$0xff]  }
 0x125   :  { %v550_v8 = vpop.f32.mrf.mxu0 }
 0x126   :  { %v735_v11 = vmax.f32 %v660_v6, 0.0  ;;  %v764_v18 = vpack.c.bf16 %v734_v7, %v732_v12  ;;  %v664_v25 = vadd.f32 %v663_v51, %v550_v8  ;;  %v4374_v0 = vpop.f32.mrf.mxu1  ;;  %v3803_v6 = vld [vmem:[%s5240_s4 + $0x260] ss:$16 sps:$4 sm:$0xff]  }
 0x127   :  { %v552_v13 = vpop.f32.mrf.mxu0 }
 0x128   :  { %v765_v15 = vpack.c.bf16 %v735_v11, %v733_v10  ;;  %v666_v23 = vadd.f32 %v665_v52, %v552_v13  ;;  %v736_v37 = vmax.f32 %v664_v25, 0.0  ;;  %v4382_v39 = vpop.f32.mrf.mxu1  ;;  %v3808_v10 = vld [vmem:[%s5240_s4 + $0x44] ss:$16 sps:$4 sm:$0xff]  }
 0x129   :  { %v554_v19 = vpop.f32.mrf.mxu0  ;;  %v3811_v11 = vld [vmem:[%s5240_s4 + $0x244] ss:$16 sps:$4 sm:$0xff]  }
 0x12a   :  { %v668_v24 = vadd.f32 %v667_v53, %v554_v19  ;;  %3290 = vmatprep.mubr.msk.bf16.mxu1 %vm1018_vm0, %v765_v15  ;;  %3298 = vmatprep.mubr.msk.bf16.mxu0 %vm1018_vm0, %v765_v15  ;;  %v737_v35 = vmax.f32 %v666_v23, 0.0  ;;  %v4401_v51 = vpop.f32.mrf.mxu1  ;;  %v3794_v53 = vld [vmem:[%s5240_s4 + $0x80] ss:$16 sps:$4 sm:$0xff]  }
 0x12b   :  { %v556_v26 = vpop.f32.mrf.mxu0  ;;  %1076 = vmatmul.mubr.bf16.vlgmr.msra.gmra.mxu1 %v764_v18  ;;  %1189 = vmatmul.mubr.bf16.vlgmr.msra.gmra.mxu0 %v764_v18 }
 0x12c   :  { %v670_v28 = vadd.f32 %v669_v54, %v556_v26  ;;  %2156 = vmatpush1.bf16.msra.mxu1 %v3776_v16  ;;  %2269 = vmatpush1.bf16.msra.mxu0 %v3779_v17  ;;  %v738_v31 = vmax.f32 %v668_v24, 0.0  ;;  %v3797_v54 = vld [vmem:[%s5240_s4 + $0x280] ss:$16 sps:$4 sm:$0xff]   ;;  %v4416_v2 = vpop.f32.mrf.mxu1 }
 0x12d   :  { %v560_v32 = vpop.f32.mrf.mxu0  ;;  %2157 = vmatprep.subr.bf16.mxu1 %v3784_v21  ;;  %2270 = vmatprep.subr.bf16.mxu0 %v3787_v22 }
 0x12e   :  { %v739_v36 = vmax.f32 %v670_v28, 0.0  ;;  %v766_v43 = vpack.c.bf16 %v738_v31, %v736_v37  ;;  %v674_v49 = vadd.f32 %v4332_v55, %v560_v32  ;;  %v3802_v55 = vld [vmem:[%s5240_s4 + $0x64] ss:$16 sps:$4 sm:$0xff]   ;;  %v4435_v17 = vpop.f32.mrf.mxu1 }
 0x12f   :  { %v562_v38 = vpop.f32.mrf.mxu0 }
 0x130   :  { %v767_v40 = vpack.c.bf16 %v739_v36, %v737_v35  ;;  %2158 = vmatpush1.bf16.msra.mxu1 %v3782_v29  ;;  %2271 = vmatpush1.bf16.msra.mxu0 %v3785_v30  ;;  %v676_v47 = vadd.f32 %v4334_v56, %v562_v38  ;;  %v740_v62 = vmax.f32 %v674_v49, 0.0  ;;  %v4450_v26 = vpop.f32.mrf.mxu1  ;;  %v3812_v29 = vld [vmem:[%s5240_s4 + $0x20] ss:$16 sps:$4 sm:$0xff]  }
 0x131   :  { %v564_v44 = vpop.f32.mrf.mxu0  ;;  %2159 = vmatprep.subr.bf16.mxu1 %v3790_v33  ;;  %2272 = vmatprep.subr.bf16.mxu0 %v3793_v34  ;;  %v3815_v30 = vld [vmem:[%s5240_s4 + $0x220] ss:$16 sps:$4 sm:$0xff]   ;;  %v3820_v33 = vld [vmem:[%s5240_s4 + $0x4] ss:$16 sps:$4 sm:$0xff]  }
 0x132   :  { %v678_v48 = vadd.f32 %v4336_v57, %v564_v44  ;;  %3291 = vmatprep.mubr.msk.bf16.mxu1 %vm1018_vm0, %v767_v40  ;;  %3299 = vmatprep.mubr.msk.bf16.mxu0 %vm1018_vm0, %v767_v40  ;;  %v3823_v34 = vld [vmem:[%s5240_s4 + $0x204] ss:$16 sps:$4 sm:$0xff]   ;;  %v4469_v40 = vpop.f32.mrf.mxu1 }
 0x133   :  { %v566_v50 = vpop.f32.mrf.mxu0  ;;  %1086 = vmatmul.mubr.bf16.gmra.mxu1 %v766_v43  ;;  %1199 = vmatmul.mubr.bf16.gmra.mxu0 %v766_v43 }
 0x134   :  { %v680_v52 = vadd.f32 %v4338_v59, %v566_v50  ;;  %2160 = vmatpush1.bf16.msra.mxu1 %v3788_v41  ;;  %2273 = vmatpush1.bf16.msra.mxu0 %v3791_v42  ;;  %v742_v56 = vmax.f32 %v678_v48, 0.0  ;;  %v741_v59 = vmax.f32 %v676_v47, 0.0  ;;  %v717_v48 = vpop.f32.mrf.mxu1  ;;  %v3824_v50 = vld [vmem:[%s5240_s4 + $0x1e0] ss:$16 sps:$4 sm:$0xff]  }
 0x135   :  { %v570_v57 = vpop.f32.mrf.mxu0  ;;  %2161 = vmatprep.subr.bf16.mxu1 %v3796_v45  ;;  %2274 = vmatprep.subr.bf16.mxu0 %v3799_v46 }
 0x136   :  { %v743_v60 = vmax.f32 %v680_v52, 0.0  ;;  %v768_v7 = vpack.c.bf16 %v742_v56, %v740_v62  ;;  %v684_v15 = vadd.f32 %v4340_v61, %v570_v57  ;;  %v3814_v61 = vld [vmem:[%s5240_s4 + $0x24] ss:$16 sps:$4 sm:$0xff]   ;;  %v3827_v52 = vld [vmem:[%s5240_s4 + $0x3e0] ss:$16 sps:$4 sm:$0xff]   ;;  %v719_v62 = vpop.f32.mrf.mxu1 }
 0x137   :  { %v572_v1 = vpop.f32.mrf.mxu0  ;;  %v3832_v56 = vld [vmem:[%s5240_s4 + $0x1c4] ss:$16 sps:$4 sm:$0xff]  }
 0x138   :  { %v769_v3 = vpack.c.bf16 %v743_v60, %v741_v59  ;;  %2162 = vmatpush1.bf16.msra.mxu1 %v3794_v53  ;;  %2275 = vmatpush1.bf16.msra.mxu0 %v3797_v54  ;;  %v686_v12 = vadd.f32 %v4342_v63, %v572_v1  ;;  %v3806_v63 = vld [vmem:[%s5240_s4 + $0x40] ss:$16 sps:$4 sm:$0xff]   ;;  %v744_v24 = vmax.f32 %v684_v15, 0.0  ;;  %v3835_v57 = vld [vmem:[%s5240_s4 + $0x3c4] ss:$16 sps:$4 sm:$0xff]  }
 0x139   :  { %v574_v8 = vpop.f32.mrf.mxu0  ;;  %2163 = vmatprep.subr.bf16.mxu1 %v3802_v55  ;;  %2276 = vmatprep.subr.bf16.mxu0 %v3805_v58  ;;  %v3836_v15 = vld [vmem:[%s5240_s4 + $0x1a0] ss:$16 sps:$4 sm:$0xff]  }
 0x13a   :  { %v688_v13 = vadd.f32 %v4344_v5, %v574_v8  ;;  %3292 = vmatprep.mubr.msk.bf16.mxu1 %vm1018_vm0, %v769_v3  ;;  %3300 = vmatprep.mubr.msk.bf16.mxu0 %vm1018_vm0, %v769_v3  ;;  %v3809_v5 = vld [vmem:[%s5240_s4 + $0x240] ss:$16 sps:$4 sm:$0xff]   ;;  %v745_v22 = vmax.f32 %v686_v12, 0.0  ;;  %v723_v12 = vpop.f32.mrf.mxu1 }
 0x13b   :  { %v576_v16 = vpop.f32.mrf.mxu0  ;;  %1096 = vmatmul.mubr.bf16.gmra.mxu1 %v768_v7  ;;  %1209 = vmatmul.mubr.bf16.gmra.mxu0 %v768_v7 }
 0x13c   :  { %v690_v18 = vadd.f32 %v4346_v9, %v576_v16  ;;  %2164 = vmatpush1.bf16.msra.mxu1 %v3800_v4  ;;  %2277 = vmatpush1.bf16.msra.mxu0 %v3803_v6  ;;  %v746_v19 = vmax.f32 %v688_v13, 0.0  ;;  %v3817_v9 = vld [vmem:[%s5240_s4 + $0x224] ss:$16 sps:$4 sm:$0xff]   ;;  %v3839_v16 = vld [vmem:[%s5240_s4 + $0x3a0] ss:$16 sps:$4 sm:$0xff]  }
 0x13d   :  { %v580_v21 = vpop.f32.mrf.mxu0  ;;  %2165 = vmatprep.subr.bf16.mxu1 %v3808_v10  ;;  %2278 = vmatprep.subr.bf16.mxu0 %v3811_v11  ;;  %v3841_v6 = vld [vmem:[%s5240_s4 + $0x3a4] ss:$16 sps:$4 sm:$0xff]  }
 0x13e   :  { %v747_v23 = vmax.f32 %v690_v18, 0.0  ;;  %v770_v31 = vpack.c.bf16 %v746_v19, %v744_v24  ;;  %v694_v37 = vadd.f32 %v4348_v14, %v580_v21  ;;  %v3826_v14 = vld [vmem:[%s5240_s4 + $0x1e4] ss:$16 sps:$4 sm:$0xff]   ;;  %v3842_v24 = vld [vmem:[%s5240_s4 + $0x180] ss:$16 sps:$4 sm:$0xff]  }
 0x13f   :  { %v582_v25 = vpop.f32.mrf.mxu0 }
 0x140   :  { %v771_v28 = vpack.c.bf16 %v747_v23, %v745_v22  ;;  %2166 = vmatpush1.bf16.msra.mxu1 %v3806_v63  ;;  %2279 = vmatpush1.bf16.msra.mxu0 %v3809_v5  ;;  %v696_v35 = vadd.f32 %v4356_v20, %v582_v25  ;;  %v3818_v20 = vld [vmem:[%s5240_s4] ss:$16 sps:$4 sm:$0xff]   ;;  %v748_v46 = vmax.f32 %v694_v37, 0.0  ;;  %v3844_v63 = vld [vmem:[%s5240_s4 + $0x184] ss:$16 sps:$4 sm:$0xff]  }
 0x141   :  { %v584_v32 = vpop.f32.mrf.mxu0  ;;  %2167 = vmatprep.subr.bf16.mxu1 %v3814_v61  ;;  %2280 = vmatprep.subr.bf16.mxu0 %v3817_v9  ;;  %v3847_v5 = vld [vmem:[%s5240_s4 + $0x384] ss:$16 sps:$4 sm:$0xff]   ;;  %v725_v9 = vpop.f32.mrf.mxu1  ;;  %v3845_v25 = vld [vmem:[%s5240_s4 + $0x380] ss:$16 sps:$4 sm:$0xff]  }
 0x142   :  { %v698_v36 = vadd.f32 %v4366_v27, %v584_v32  ;;  %3293 = vmatprep.mubr.msk.bf16.mxu1 %vm1018_vm0, %v771_v28  ;;  %3301 = vmatprep.mubr.msk.bf16.mxu0 %vm1018_vm0, %v771_v28  ;;  %v3821_v27 = vld [vmem:[%s5240_s4 + $0x200] ss:$16 sps:$4 sm:$0xff]   ;;  %v749_v44 = vmax.f32 %v696_v35, 0.0 }
 0x143   :  { %v586_v38 = vpop.f32.mrf.mxu0  ;;  %1106 = vmatmul.mubr.bf16.gmra.mxu1 %v770_v31  ;;  %1219 = vmatmul.mubr.bf16.gmra.mxu0 %v770_v31  ;;  %v3848_v37 = vld [vmem:[%s5240_s4 + $0x160] ss:$16 sps:$4 sm:$0xff]  }
 0x144   :  { %v700_v41 = vadd.f32 %v4374_v0, %v586_v38  ;;  %2168 = vmatpush1.bf16.msra.mxu1 %v3812_v29  ;;  %2281 = vmatpush1.bf16.msra.mxu0 %v3815_v30  ;;  %v750_v42 = vmax.f32 %v698_v36, 0.0  ;;  %v3829_v0 = vld [vmem:[%s5240_s4 + $0x3e4] ss:$16 sps:$4 sm:$0xff]   ;;  %v3851_v38 = vld [vmem:[%s5240_s4 + $0x360] ss:$16 sps:$4 sm:$0xff]  }
 0x145   :  { %v590_v43 = vpop.f32.mrf.mxu0  ;;  %2169 = vmatprep.subr.bf16.mxu1 %v3820_v33  ;;  %2282 = vmatprep.subr.bf16.mxu0 %v3823_v34  ;;  %v3853_v30 = vld [vmem:[%s5240_s4 + $0x364] ss:$16 sps:$4 sm:$0xff]   ;;  %v727_v34 = vpop.f32.mrf.mxu1 }
 0x146   :  { %v751_v45 = vmax.f32 %v700_v41, 0.0  ;;  %v772_v53 = vpack.c.bf16 %v750_v42, %v748_v46  ;;  %v704_v59 = vadd.f32 %v4382_v39, %v590_v43  ;;  %v3838_v39 = vld [vmem:[%s5240_s4 + $0x1a4] ss:$16 sps:$4 sm:$0xff]  }
 0x147   :  { %v592_v47 = vpop.f32.mrf.mxu0  ;;  %v729_v43 = vpop.f32.mrf.mxu1 }
 0x148   :  { %v773_v49 = vpack.c.bf16 %v751_v45, %v749_v44  ;;  %2170 = vmatpush1.bf16.msra.mxu1 %v3818_v20  ;;  %2283 = vmatpush1.bf16.msra.mxu0 %v3821_v27  ;;  %v706_v55 = vadd.f32 %v4401_v51, %v592_v47  ;;  %v3830_v51 = vld [vmem:[%s5240_s4 + $0x1c0] ss:$16 sps:$4 sm:$0xff]   ;;  %v752_v10 = vmax.f32 %v704_v59, 0.0  ;;  %v3868_v59 = vld [vmem:[%s5240_s4 + $0x104] ss:$16 sps:$4 sm:$0xff]  }
 0x149   :  { %v594_v54 = vpop.f32.mrf.mxu0  ;;  %2171 = vmatprep.subr.bf16.mxu1 %v3826_v14  ;;  %2284 = vmatprep.subr.bf16.mxu0 %v3829_v0 }
 0x14a   :  { %v708_v58 = vadd.f32 %v4416_v2, %v594_v54  ;;  %3294 = vmatprep.mubr.msk.bf16.mxu1 %vm1018_vm0, %v773_v49  ;;  %3302 = vmatprep.mubr.msk.bf16.mxu0 %vm1018_vm0, %v773_v49  ;;  %v3833_v2 = vld [vmem:[%s5240_s4 + $0x3c0] ss:$16 sps:$4 sm:$0xff]   ;;  %v753_v7 = vmax.f32 %v706_v55, 0.0 }
 0x14b   :  { %v596_v60 = vpop.f32.mrf.mxu0  ;;  %1116 = vmatmul.mubr.bf16.gmra.mxu1 %v772_v53  ;;  %1229 = vmatmul.mubr.bf16.gmra.mxu0 %v772_v53  ;;  %v3854_v53 = vld [vmem:[%s5240_s4 + $0x140] ss:$16 sps:$4 sm:$0xff]  }
 0x14c   :  { %v710_v1 = vadd.f32 %v4435_v17, %v596_v60  ;;  %2172 = vmatpush2.bf16.msra.mxu1 %v3824_v50  ;;  %2285 = vmatpush2.bf16.msra.mxu0 %v3827_v52  ;;  %v754_v3 = vmax.f32 %v708_v58, 0.0  ;;  %v3856_v50 = vld [vmem:[%s5240_s4 + $0x144] ss:$16 sps:$4 sm:$0xff]   ;;  %v3857_v54 = vld [vmem:[%s5240_s4 + $0x340] ss:$16 sps:$4 sm:$0xff]  }
 0x14d   :  { %v600_v4 = vpop.f32.mrf.mxu0  ;;  %2173 = vmatprep.subr.bf16.mxu1 %v3832_v56  ;;  %2286 = vmatprep.subr.bf16.mxu0 %v3835_v57  ;;  %v3859_v52 = vld [vmem:[%s5240_s4 + $0x344] ss:$16 sps:$4 sm:$0xff]   ;;  %v3860_v55 = vld [vmem:[%s5240_s4 + $0x120] ss:$16 sps:$4 sm:$0xff]  }
 0x14e   :  { %v755_v8 = vmax.f32 %v710_v1, 0.0  ;;  %v774_v17 = vpack.c.bf16 %v754_v3, %v752_v10  ;;  %v714_v61 = vadd.f32 %v4450_v26, %v600_v4  ;;  %v3850_v26 = vld [vmem:[%s5240_s4 + $0x164] ss:$16 sps:$4 sm:$0xff]   ;;  %v3863_v58 = vld [vmem:[%s5240_s4 + $0x320] ss:$16 sps:$4 sm:$0xff]   ;;  %v818_v3 = vlaneseq }
 0x14f   :  { %v602_v11 = vpop.f32.mrf.mxu0  ;;  %v3862_v56 = vld [vmem:[%s5240_s4 + $0x124] ss:$16 sps:$4 sm:$0xff]   ;;  %v3869_v1 = vld [vmem:[%s5240_s4 + $0x300] ss:$16 sps:$4 sm:$0xff]  }
 0x150   :  { %v775_v13 = vpack.c.bf16 %v755_v8, %v753_v7  ;;  %2174 = vmatpush2.bf16.msra.mxu1 %v3830_v51  ;;  %2287 = vmatpush2.bf16.msra.mxu0 %v3833_v2  ;;  %v716_v19 = vadd.f32 %v4469_v40, %v602_v11  ;;  %v756_v33 = vmax.f32 %v714_v61, 0.0  ;;  %v3865_v57 = vld [vmem:[%s5240_s4 + $0x324] ss:$16 sps:$4 sm:$0xff]   ;;  %v3874_v51 = vld [vmem:[%s5240_s4 + $0xec] ss:$16 sps:$4 sm:$0xff]   ;;  %v4594_v4 = vshrl.u32 %v818_v3, 7 }
 0x151   :  { %v604_v18 = vpop.f32.mrf.mxu0  ;;  %2175 = vmatprep.subr.bf16.mxu1 %v3838_v39  ;;  %2288 = vmatprep.subr.bf16.mxu0 %v3841_v6  ;;  %v3871_v60 = vld [vmem:[%s5240_s4 + $0x304] ss:$16 sps:$4 sm:$0xff]   ;;  %v3877_v2 = vld [vmem:[%s5240_s4 + $0x2ec] ss:$16 sps:$4 sm:$0xff]   ;;  %v816_v10 = vld [vmem:[%s5239_s3] sm:$0xf] }
 0x152   :  { %v718_v21 = vadd.f32 %v717_v48, %v604_v18  ;;  %3295 = vmatprep.mubr.msk.bf16.mxu1 %vm1018_vm0, %v775_v13  ;;  %3303 = vmatprep.mubr.msk.bf16.mxu0 %vm1018_vm0, %v775_v13  ;;  %v757_v31 = vmax.f32 %v716_v19, 0.0  ;;  %v824_v39 = vsub.s32 1, %v4594_v4  ;;  %v832_v6 = vsub.s32 3, %v4594_v4 }
 0x153   :  { %v606_v22 = vpop.f32.mrf.mxu0  ;;  %1126 = vmatmul.mubr.bf16.gmra.mxu1 %v774_v17  ;;  %1239 = vmatmul.mubr.bf16.gmra.mxu0 %v774_v17  ;;  %v820_v7 = vsub.s32 0, %v4594_v4  ;;  %v828_v8 = vsub.s32 2, %v4594_v4 }
 0x154   :  { %v720_v23 = vadd.f32 %v719_v62, %v606_v22  ;;  %2176 = vmatpush2.bf16.msra.mxu1 %v3836_v15  ;;  %2289 = vmatpush2.bf16.msra.mxu0 %v3839_v16  ;;  %v758_v28 = vmax.f32 %v718_v21, 0.0  ;;  %v3866_v62 = vld [vmem:[%s5240_s4 + $0x100] ss:$16 sps:$4 sm:$0xff]   ;;  %v4605_v13 = vrot.slane %v816_v10, %v824_v39  ;;  %v4609_v15 = vrot.slane %v816_v10, %v832_v6 }
 0x155   :  { %v610_v29 = vpop.f32.mrf.mxu0  ;;  %2177 = vmatprep.subr.bf16.mxu1 %v3844_v63  ;;  %2290 = vmatprep.subr.bf16.mxu0 %v3847_v5  ;;  %v4613_v16 = vrot.slane %v816_v10, %v820_v7  ;;  %v4617_v17 = vrot.slane %v816_v10, %v828_v8  ;;  %v3886_v10 = vld [vmem:[%s5240_s4 + $0xac] ss:$16 sps:$4 sm:$0xff]  }
 0x156   :  { %v759_v32 = vmax.f32 %v720_v23, 0.0  ;;  %v776_v40 = vpack.c.bf16 %v758_v28, %v756_v33  ;;  %v724_v42 = vadd.f32 %v723_v12, %v610_v29 }
 0x157   :  { %v612_v35 = vpop.f32.mrf.mxu0 }
 0x158   :  { %v777_v36 = vpack.c.bf16 %v759_v32, %v757_v31  ;;  %2178 = vmatpush2.bf16.msra.mxu1 %v3842_v24  ;;  %2291 = vmatpush2.bf16.msra.mxu0 %v3845_v25  ;;  %v726_v20 = vadd.f32 %v725_v9, %v612_v35  ;;  %v760_v47 = vmax.f32 %v724_v42, 0.0 }
 0x159   :  { %v614_v41 = vpop.f32.mrf.mxu0  ;;  %2179 = vmatprep.subr.bf16.mxu1 %v3850_v26  ;;  %2292 = vmatprep.subr.bf16.mxu0 %v3853_v30 }
 0x15a   :  { %v728_v27 = vadd.f32 %v727_v34, %v614_v41  ;;  %3296 = vmatprep.mubr.msk.bf16.mxu1 %vm1018_vm0, %v777_v36  ;;  %3304 = vmatprep.mubr.msk.bf16.mxu0 %vm1018_vm0, %v777_v36  ;;  %v761_v45 = vmax.f32 %v726_v20, 0.0 }
 0x15b   :  { %v616_v14 = vpop.f32.mrf.mxu0  ;;  %1136 = vmatmul.mubr.bf16.gmra.mxu1 %v776_v40  ;;  %1249 = vmatmul.mubr.bf16.gmra.mxu0 %v776_v40 }
 0x15c   :  { %v730_v0 = vadd.f32 %v729_v43, %v616_v14  ;;  %2180 = vmatpush2.bf16.msra.mxu1 %v3848_v37  ;;  %2293 = vmatpush2.bf16.msra.mxu0 %v3851_v38  ;;  %v762_v44 = vmax.f32 %v728_v27, 0.0  ;;  %v3872_v43 = vld [vmem:[%s5240_s4 + $0xe8] ss:$16 sps:$4 sm:$0xff]  }
 0x15d   :  { %2181 = vmatprep.subr.bf16.mxu1 %v3856_v50  ;;  %2294 = vmatprep.subr.bf16.mxu0 %v3859_v52  ;;  %v3875_v14 = vld [vmem:[%s5240_s4 + $0x2e8] ss:$16 sps:$4 sm:$0xff]  }
 0x15e   :  { %v763_v46 = vmax.f32 %v730_v0, 0.0  ;;  %v778_v49 = vpack.c.bf16 %v762_v44, %v760_v47  ;;  %v3880_v47 = vld [vmem:[%s5240_s4 + $0xcc] ss:$16 sps:$4 sm:$0xff]  }
 0x160   :  { %v779_v48 = vpack.c.bf16 %v763_v46, %v761_v45  ;;  %2182 = vmatpush2.bf16.msra.mxu1 %v3854_v53  ;;  %2295 = vmatpush2.bf16.msra.mxu0 %v3857_v54 }
 0x161   :  { %2183 = vmatprep.subr.bf16.mxu1 %v3862_v56  ;;  %2296 = vmatprep.subr.bf16.mxu0 %v3865_v57 }
 0x162   :  { %3297 = vmatprep.mubr.msk.bf16.mxu1 %vm1018_vm0, %v779_v48  ;;  %3305 = vmatprep.mubr.msk.bf16.mxu0 %vm1018_vm0, %v779_v48  ;;  %v3883_v48 = vld [vmem:[%s5240_s4 + $0x2cc] ss:$16 sps:$4 sm:$0xff]  }
 0x163   :  { %1146 = vmatmul.mubr.bf16.gmra.mxu1 %v778_v49  ;;  %1259 = vmatmul.mubr.bf16.gmra.mxu0 %v778_v49 }
 0x164   :  { %2184 = vmatpush2.bf16.msra.mxu1 %v3860_v55  ;;  %2297 = vmatpush2.bf16.msra.mxu0 %v3863_v58 }
 0x165   :  { %2185 = vmatprep.subr.bf16.mxu1 %v3868_v59  ;;  %2298 = vmatprep.subr.bf16.mxu0 %v3871_v60  ;;  %v3878_v60 = vld [vmem:[%s5240_s4 + $0xc8] ss:$16 sps:$4 sm:$0xff]  }
 0x168   :  { %2186 = vmatpush2.bf16.msra.mxu1 %v3866_v62  ;;  %2299 = vmatpush2.bf16.msra.mxu0 %v3869_v1  ;;  %v3881_v62 = vld [vmem:[%s5240_s4 + $0x2c8] ss:$16 sps:$4 sm:$0xff]  }
 0x169   :  { %2381 = vmatprep.subr.bf16.mxu1 %v3874_v51  ;;  %2494 = vmatprep.subr.bf16.mxu0 %v3877_v2 }
 0x1eb   :  { %v1077_v11 = vpop.f32.mrf.mxu1  ;;  %v1190_v12 = vpop.f32.mrf.mxu0 }
 0x1ec   :  { %v1078_v23 = vadd.f32 %v1077_v11, %v4613_v16  ;;  %v1191_v24 = vadd.f32 %v1190_v12, %v4617_v17  ;;  %v3889_v11 = vld [vmem:[%s5240_s4 + $0x2ac] ss:$16 sps:$4 sm:$0xff]  }
 0x1ed   :  { %v1079_v18 = vpop.f32.mrf.mxu1  ;;  %v1192_v63 = vpop.f32.mrf.mxu0 }
 0x1ee   :  { %v1080_v21 = vadd.f32 %v1079_v18, %v4605_v13  ;;  %v1193_v61 = vadd.f32 %v1192_v63, %v4609_v15  ;;  %v1269_v38 = vmax.f32 %v1078_v23, 0.0  ;;  %v1271_v40 = vmax.f32 %v1191_v24, 0.0  ;;  %v3884_v23 = vld [vmem:[%s5240_s4 + $0xa8] ss:$16 sps:$4 sm:$0xff]  }
 0x1ef   :  { %v1081_v5 = vpop.f32.mrf.mxu1  ;;  %v1194_v19 = vpop.f32.mrf.mxu0 }
 0x1f0   :  { %v1082_v9 = vadd.f32 %v1081_v5, %v4613_v16  ;;  %v1195_v22 = vadd.f32 %v1194_v19, %v4617_v17  ;;  %v1270_v34 = vmax.f32 %v1080_v21, 0.0  ;;  %v1272_v35 = vmax.f32 %v1193_v61, 0.0 }
 0x1f1   :  { %v1083_v25 = vpop.f32.mrf.mxu1  ;;  %v1196_v28 = vpop.f32.mrf.mxu0 }
 0x1f2   :  { %v1084_v29 = vadd.f32 %v1083_v25, %v4605_v13  ;;  %v1197_v26 = vadd.f32 %v1196_v28, %v4609_v15  ;;  %v1273_v30 = vmax.f32 %v1082_v9, 0.0  ;;  %v1275_v31 = vmax.f32 %v1195_v22, 0.0 }
 0x1f3   :  { %v1087_v32 = vpop.f32.mrf.mxu1  ;;  %v1200_v33 = vpop.f32.mrf.mxu0 }
 0x1f4   :  { %v1274_v36 = vmax.f32 %v1084_v29, 0.0  ;;  %v1276_v37 = vmax.f32 %v1197_v26, 0.0  ;;  %v4637_v0 = vpack.c.bf16 %v1273_v30, %v1269_v38  ;;  %v4639_v44 = vpack.c.bf16 %v1275_v31, %v1271_v40  ;;  %v3887_v30 = vld [vmem:[%s5240_s4 + $0x2a8] ss:$16 sps:$4 sm:$0xff]   ;;  %v3892_v31 = vld [vmem:[%s5240_s4 + $0x8c] ss:$16 sps:$4 sm:$0xff]  }
 0x1f5   :  { %v1089_v41 = vpop.f32.mrf.mxu1  ;;  %v1202_v20 = vpop.f32.mrf.mxu0  ;;  %v1088_v53 = vadd.f32 %v1087_v32, %v4613_v16  ;;  %v1201_v54 = vadd.f32 %v1200_v33, %v4617_v17 }
 0x1f6   :  { %v4627_v27 = vpack.c.bf16 %v1274_v36, %v1270_v34  ;;  %v4629_v42 = vpack.c.bf16 %v1276_v37, %v1272_v35  ;;  %v1090_v49 = vadd.f32 %v1089_v41, %v4605_v13  ;;  %v1203_v56 = vadd.f32 %v1202_v20, %v4609_v15  ;;  %v3895_v36 = vld [vmem:[%s5240_s4 + $0x28c] ss:$16 sps:$4 sm:$0xff]  }
 0x1f7   :  { %v1091_v45 = vpop.f32.mrf.mxu1  ;;  %v1204_v46 = vpop.f32.mrf.mxu0  ;;  %v1277_v5 = vmax.f32 %v1088_v53, 0.0  ;;  %v1279_v19 = vmax.f32 %v1201_v54, 0.0 }
 0x1f8   :  { %v1092_v50 = vadd.f32 %v1091_v45, %v4613_v16  ;;  %v1205_v52 = vadd.f32 %v1204_v46, %v4617_v17  ;;  %2187 = vmatprep.mubr.bf16.mxu1 %v4627_v27  ;;  %2300 = vmatprep.mubr.bf16.mxu0 %v4629_v42  ;;  %v1278_v12 = vmax.f32 %v1090_v49, 0.0  ;;  %v1280_v21 = vmax.f32 %v1203_v56, 0.0  ;;  %v3893_v49 = vld [vmem:[%s5240_s4 + $0x288] ss:$16 sps:$4 sm:$0xff]  }
 0x1f9   :  { %v1093_v57 = vpop.f32.mrf.mxu1  ;;  %v1206_v55 = vpop.f32.mrf.mxu0  ;;  %2188 = vmatmul.mubr.bf16.vlgmr.msra.gmra.mxu1 %v4637_v0  ;;  %2301 = vmatmul.mubr.bf16.vlgmr.msra.gmra.mxu0 %v4639_v44 }
 0x1fa   :  { %v1094_v58 = vadd.f32 %v1093_v57, %v4605_v13  ;;  %v1207_v59 = vadd.f32 %v1206_v55, %v4609_v15  ;;  %2382 = vmatpush1.bf16.msra.mxu1 %v3872_v43  ;;  %2495 = vmatpush1.bf16.msra.mxu0 %v3875_v14  ;;  %v1281_v1 = vmax.f32 %v1092_v50, 0.0  ;;  %v1283_v51 = vmax.f32 %v1205_v52, 0.0  ;;  %v3890_v14 = vld [vmem:[%s5240_s4 + $0x88] ss:$16 sps:$4 sm:$0xff]   ;;  %v3898_v50 = vld [vmem:[%s5240_s4 + $0x6c] ss:$16 sps:$4 sm:$0xff]  }
 0x1fb   :  { %v1097_v2 = vpop.f32.mrf.mxu1  ;;  %v1210_v3 = vpop.f32.mrf.mxu0  ;;  %2383 = vmatprep.subr.bf16.mxu1 %v3880_v47  ;;  %2496 = vmatprep.subr.bf16.mxu0 %v3883_v48 }
 0x1fc   :  { %v1282_v18 = vmax.f32 %v1094_v58, 0.0  ;;  %v1284_v63 = vmax.f32 %v1207_v59, 0.0  ;;  %v4676_v24 = vpack.c.bf16 %v1281_v1, %v1277_v5  ;;  %v4678_v25 = vpack.c.bf16 %v1283_v51, %v1279_v19  ;;  %v3896_v51 = vld [vmem:[%s5240_s4 + $0x68] ss:$16 sps:$4 sm:$0xff]  }
 0x1fd   :  { %v1099_v61 = vpop.f32.mrf.mxu1  ;;  %v1212_v9 = vpop.f32.mrf.mxu0  ;;  %v1098_v37 = vadd.f32 %v1097_v2, %v4613_v16  ;;  %v1211_v38 = vadd.f32 %v1210_v3, %v4617_v17 }
 0x1fe   :  { %2384 = vmatpush1.bf16.msra.mxu1 %v3878_v60  ;;  %2497 = vmatpush1.bf16.msra.mxu0 %v3881_v62  ;;  %v4671_v22 = vpack.c.bf16 %v1282_v18, %v1278_v12  ;;  %v4680_v26 = vpack.c.bf16 %v1284_v63, %v1280_v21  ;;  %v1100_v32 = vadd.f32 %v1099_v61, %v4605_v13  ;;  %v3901_v60 = vld [vmem:[%s5240_s4 + $0x26c] ss:$16 sps:$4 sm:$0xff]   ;;  %v3899_v18 = vld [vmem:[%s5240_s4 + $0x268] ss:$16 sps:$4 sm:$0xff]  }
 0x1ff   :  { %v1101_v28 = vpop.f32.mrf.mxu1  ;;  %v1214_v29 = vpop.f32.mrf.mxu0  ;;  %2385 = vmatprep.subr.bf16.mxu1 %v3886_v10  ;;  %2498 = vmatprep.subr.bf16.mxu0 %v3889_v11  ;;  %v1213_v33 = vadd.f32 %v1212_v9, %v4609_v15  ;;  %v1285_v57 = vmax.f32 %v1098_v37, 0.0  ;;  %v1287_v55 = vmax.f32 %v1211_v38, 0.0  ;;  %v3904_v63 = vld [vmem:[%s5240_s4 + $0x4c] ss:$16 sps:$4 sm:$0xff]   ;;  %v3905_v37 = vld [vmem:[%s5240_s4 + $0x248] ss:$16 sps:$4 sm:$0xff]  }
 0x200   :  { %v1102_v34 = vadd.f32 %v1101_v28, %v4613_v16  ;;  %v1215_v35 = vadd.f32 %v1214_v29, %v4617_v17  ;;  %2197 = vmatprep.mubr.bf16.mxu1 %v4671_v22  ;;  %2310 = vmatprep.mubr.bf16.mxu0 %v4680_v26  ;;  %v1286_v52 = vmax.f32 %v1100_v32, 0.0  ;;  %v3907_v61 = vld [vmem:[%s5240_s4 + $0x24c] ss:$16 sps:$4 sm:$0xff]   ;;  %v3902_v32 = vld [vmem:[%s5240_s4 + $0x48] ss:$16 sps:$4 sm:$0xff]  }
 0x201   :  { %v1103_v40 = vpop.f32.mrf.mxu1  ;;  %v1216_v41 = vpop.f32.mrf.mxu0  ;;  %2198 = vmatmul.mubr.bf16.gmra.mxu1 %v4676_v24  ;;  %2311 = vmatmul.mubr.bf16.gmra.mxu0 %v4678_v25  ;;  %v1288_v53 = vmax.f32 %v1213_v33, 0.0  ;;  %v3910_v38 = vld [vmem:[%s5240_s4 + $0x2c] ss:$16 sps:$4 sm:$0xff]  }
 0x202   :  { %v1104_v20 = vadd.f32 %v1103_v40, %v4605_v13  ;;  %v1217_v43 = vadd.f32 %v1216_v41, %v4609_v15  ;;  %2386 = vmatpush1.bf16.msra.mxu1 %v3884_v23  ;;  %v1289_v45 = vmax.f32 %v1102_v34, 0.0  ;;  %v1291_v46 = vmax.f32 %v1215_v35, 0.0  ;;  %2499 = vmatpush1.bf16.msra.mxu0 %v3887_v30 }
 0x203   :  { %v1107_v47 = vpop.f32.mrf.mxu1  ;;  %v1220_v48 = vpop.f32.mrf.mxu0  ;;  %2387 = vmatprep.subr.bf16.mxu1 %v3892_v31  ;;  %2500 = vmatprep.subr.bf16.mxu0 %v3895_v36 }
 0x204   :  { %v1290_v54 = vmax.f32 %v1104_v20, 0.0  ;;  %v1292_v56 = vmax.f32 %v1217_v43, 0.0  ;;  %v4722_v2 = vpack.c.bf16 %v1289_v45, %v1285_v57  ;;  %v4724_v3 = vpack.c.bf16 %v1291_v46, %v1287_v55 }
 0x205   :  { %v1109_v58 = vpop.f32.mrf.mxu1  ;;  %v1222_v59 = vpop.f32.mrf.mxu0  ;;  %v1108_v9 = vadd.f32 %v1107_v47, %v4613_v16  ;;  %v1221_v23 = vadd.f32 %v1220_v48, %v4617_v17  ;;  %v3913_v48 = vld [vmem:[%s5240_s4 + $0x22c] ss:$16 sps:$4 sm:$0xff]  }
 0x206   :  { %v4715_v62 = vpack.c.bf16 %v1292_v56, %v1288_v53  ;;  %2388 = vmatpush1.bf16.msra.mxu1 %v3890_v14  ;;  %v4717_v1 = vpack.c.bf16 %v1290_v54, %v1286_v52  ;;  %v1110_v10 = vadd.f32 %v1109_v58, %v4605_v13  ;;  %2501 = vmatpush1.bf16.msra.mxu0 %v3893_v49  ;;  %v3908_v52 = vld [vmem:[%s5240_s4 + $0x28] ss:$16 sps:$4 sm:$0xff]  }
 0x207   :  { %v1111_v11 = vpop.f32.mrf.mxu1  ;;  %v1224_v12 = vpop.f32.mrf.mxu0  ;;  %2389 = vmatprep.subr.bf16.mxu1 %v3898_v50  ;;  %v1223_v5 = vadd.f32 %v1222_v59, %v4609_v15  ;;  %2502 = vmatprep.subr.bf16.mxu0 %v3901_v60  ;;  %v1293_v14 = vmax.f32 %v1108_v9, 0.0  ;;  %v1295_v45 = vmax.f32 %v1221_v23, 0.0  ;;  %v3911_v58 = vld [vmem:[%s5240_s4 + $0x228] ss:$16 sps:$4 sm:$0xff]   ;;  %v3916_v59 = vld [vmem:[%s5240_s4 + $0xc] ss:$16 sps:$4 sm:$0xff]  }
 0x208   :  { %v1112_v19 = vadd.f32 %v1111_v11, %v4613_v16  ;;  %v1225_v21 = vadd.f32 %v1224_v12, %v4617_v17  ;;  %2207 = vmatprep.mubr.bf16.mxu1 %v4717_v1  ;;  %2320 = vmatprep.mubr.bf16.mxu0 %v4715_v62  ;;  %v1294_v40 = vmax.f32 %v1110_v10, 0.0  ;;  %v3919_v11 = vld [vmem:[%s5240_s4 + $0x20c] ss:$16 sps:$4 sm:$0xff]  }
 0x209   :  { %v1113_v28 = vpop.f32.mrf.mxu1  ;;  %v1226_v29 = vpop.f32.mrf.mxu0  ;;  %2208 = vmatmul.mubr.bf16.gmra.mxu1 %v4722_v2  ;;  %2321 = vmatmul.mubr.bf16.gmra.mxu0 %v4724_v3  ;;  %v1296_v41 = vmax.f32 %v1223_v5, 0.0 }
 0x20a   :  { %v1114_v30 = vadd.f32 %v1113_v28, %v4605_v13  ;;  %v1227_v31 = vadd.f32 %v1226_v29, %v4609_v15  ;;  %2390 = vmatpush1.bf16.msra.mxu1 %v3896_v51  ;;  %v1297_v33 = vmax.f32 %v1112_v19, 0.0  ;;  %v1299_v34 = vmax.f32 %v1225_v21, 0.0  ;;  %2503 = vmatpush1.bf16.msra.mxu0 %v3899_v18 }
 0x20b   :  { %v1117_v35 = vpop.f32.mrf.mxu1  ;;  %v1230_v36 = vpop.f32.mrf.mxu0  ;;  %2391 = vmatprep.subr.bf16.mxu1 %v3904_v63  ;;  %2504 = vmatprep.subr.bf16.mxu0 %v3907_v61  ;;  %v3914_v61 = vld [vmem:[%s5240_s4 + $0x8] ss:$16 sps:$4 sm:$0xff]  }
 0x20c   :  { %v1298_v20 = vmax.f32 %v1114_v30, 0.0  ;;  %v1300_v43 = vmax.f32 %v1227_v31, 0.0  ;;  %v4766_v53 = vpack.c.bf16 %v1297_v33, %v1293_v14  ;;  %v4768_v54 = vpack.c.bf16 %v1299_v34, %v1295_v45  ;;  %v3917_v30 = vld [vmem:[%s5240_s4 + $0x208] ss:$16 sps:$4 sm:$0xff]   ;;  %v3922_v31 = vld [vmem:[%s5240_s4 + $0x1ec] ss:$16 sps:$4 sm:$0xff]  }
 0x20d   :  { %v1119_v46 = vpop.f32.mrf.mxu1  ;;  %v1232_v47 = vpop.f32.mrf.mxu0  ;;  %v1118_v12 = vadd.f32 %v1117_v35, %v4613_v16  ;;  %v1231_v18 = vadd.f32 %v1230_v36, %v4617_v17  ;;  %v3920_v14 = vld [vmem:[%s5240_s4 + $0x1e8] ss:$16 sps:$4 sm:$0xff]  }
 0x20e   :  { %v4759_v49 = vpack.c.bf16 %v1300_v43, %v1296_v41  ;;  %2392 = vmatpush1.bf16.msra.mxu1 %v3902_v32  ;;  %v4761_v50 = vpack.c.bf16 %v1298_v20, %v1294_v40  ;;  %v1120_v56 = vadd.f32 %v1119_v46, %v4605_v13  ;;  %2505 = vmatpush1.bf16.msra.mxu0 %v3905_v37  ;;  %v3925_v41 = vld [vmem:[%s5240_s4 + $0x3ec] ss:$16 sps:$4 sm:$0xff]  }
 0x20f   :  { %v1121_v57 = vpop.f32.mrf.mxu1  ;;  %v1234_v55 = vpop.f32.mrf.mxu0  ;;  %2393 = vmatprep.subr.bf16.mxu1 %v3910_v38  ;;  %v1233_v60 = vadd.f32 %v1232_v47, %v4609_v15  ;;  %2506 = vmatprep.subr.bf16.mxu0 %v3913_v48  ;;  %v1301_v36 = vmax.f32 %v1118_v12, 0.0  ;;  %v1303_v37 = vmax.f32 %v1231_v18, 0.0 }
 0x210   :  { %v1122_v51 = vadd.f32 %v1121_v57, %v4613_v16  ;;  %v1235_v10 = vadd.f32 %v1234_v55, %v4617_v17  ;;  %2217 = vmatprep.mubr.bf16.mxu1 %v4761_v50  ;;  %2330 = vmatprep.mubr.bf16.mxu0 %v4759_v49  ;;  %v1302_v32 = vmax.f32 %v1120_v56, 0.0  ;;  %v3923_v56 = vld [vmem:[%s5240_s4 + $0x3e8] ss:$16 sps:$4 sm:$0xff]   ;;  %v3928_v57 = vld [vmem:[%s5240_s4 + $0x1cc] ss:$16 sps:$4 sm:$0xff]  }
 0x211   :  { %v1123_v63 = vpop.f32.mrf.mxu1  ;;  %v1236_v5 = vpop.f32.mrf.mxu0  ;;  %2218 = vmatmul.mubr.bf16.gmra.mxu1 %v4766_v53  ;;  %2331 = vmatmul.mubr.bf16.gmra.mxu0 %v4768_v54  ;;  %v1304_v33 = vmax.f32 %v1233_v60, 0.0  ;;  %v3931_v60 = vld [vmem:[%s5240_s4 + $0x3cc] ss:$16 sps:$4 sm:$0xff]  }
 0x212   :  { %v1124_v19 = vadd.f32 %v1123_v63, %v4605_v13  ;;  %v1237_v21 = vadd.f32 %v1236_v5, %v4609_v15  ;;  %2394 = vmatpush1.bf16.msra.mxu1 %v3908_v52  ;;  %v1305_v9 = vmax.f32 %v1122_v51, 0.0  ;;  %v1307_v23 = vmax.f32 %v1235_v10, 0.0  ;;  %2507 = vmatpush1.bf16.msra.mxu0 %v3911_v58  ;;  %v3926_v5 = vld [vmem:[%s5240_s4 + $0x1c8] ss:$16 sps:$4 sm:$0xff]  }
 0x213   :  { %v1127_v28 = vpop.f32.mrf.mxu1  ;;  %v1240_v29 = vpop.f32.mrf.mxu0  ;;  %2395 = vmatprep.subr.bf16.mxu1 %v3916_v59  ;;  %2508 = vmatprep.subr.bf16.mxu0 %v3919_v11 }
 0x214   :  { %v1306_v34 = vmax.f32 %v1124_v19, 0.0  ;;  %v1308_v35 = vmax.f32 %v1237_v21, 0.0  ;;  %v4810_v45 = vpack.c.bf16 %v1305_v9, %v1301_v36  ;;  %v4812_v46 = vpack.c.bf16 %v1307_v23, %v1303_v37  ;;  %v3929_v23 = vld [vmem:[%s5240_s4 + $0x3c8] ss:$16 sps:$4 sm:$0xff]   ;;  %v3937_v37 = vld [vmem:[%s5240_s4 + $0x3ac] ss:$16 sps:$4 sm:$0xff]  }
 0x215   :  { %v1129_v38 = vpop.f32.mrf.mxu1  ;;  %v1242_v40 = vpop.f32.mrf.mxu0  ;;  %v1128_v51 = vadd.f32 %v1127_v28, %v4613_v16  ;;  %v1241_v10 = vadd.f32 %v1240_v29, %v4617_v17  ;;  %v3934_v28 = vld [vmem:[%s5240_s4 + $0x1ac] ss:$16 sps:$4 sm:$0xff]  }
 0x216   :  { %v4803_v20 = vpack.c.bf16 %v1308_v35, %v1304_v33  ;;  %2396 = vmatpush1.bf16.msra.mxu1 %v3914_v61  ;;  %v4805_v43 = vpack.c.bf16 %v1306_v34, %v1302_v32  ;;  %v1130_v47 = vadd.f32 %v1129_v38, %v4605_v13  ;;  %2509 = vmatpush1.bf16.msra.mxu0 %v3917_v30 }
 0x217   :  { %v1131_v48 = vpop.f32.mrf.mxu1  ;;  %v1244_v52 = vpop.f32.mrf.mxu0  ;;  %2397 = vmatprep.subr.bf16.mxu1 %v3922_v31  ;;  %v1243_v55 = vadd.f32 %v1242_v40, %v4609_v15  ;;  %2510 = vmatprep.subr.bf16.mxu0 %v3925_v41  ;;  %v1309_v33 = vmax.f32 %v1128_v51, 0.0  ;;  %v1311_v34 = vmax.f32 %v1241_v10, 0.0  ;;  %v3932_v41 = vld [vmem:[%s5240_s4 + $0x1a8] ss:$16 sps:$4 sm:$0xff]   ;;  %v3943_v51 = vld [vmem:[%s5240_s4 + $0x38c] ss:$16 sps:$4 sm:$0xff]  }
 0x218   :  { %v1132_v58 = vadd.f32 %v1131_v48, %v4613_v16  ;;  %v1245_v59 = vadd.f32 %v1244_v52, %v4617_v17  ;;  %2227 = vmatprep.mubr.bf16.mxu1 %v4805_v43  ;;  %2340 = vmatprep.mubr.bf16.mxu0 %v4803_v20  ;;  %v1310_v29 = vmax.f32 %v1130_v47, 0.0 }
 0x219   :  { %v1133_v11 = vpop.f32.mrf.mxu1  ;;  %v1246_v12 = vpop.f32.mrf.mxu0  ;;  %2228 = vmatmul.mubr.bf16.gmra.mxu1 %v4810_v45  ;;  %2341 = vmatmul.mubr.bf16.gmra.mxu0 %v4812_v46  ;;  %v1312_v30 = vmax.f32 %v1243_v55, 0.0  ;;  %v3940_v55 = vld [vmem:[%s5240_s4 + $0x18c] ss:$16 sps:$4 sm:$0xff]  }
 0x21a   :  { %v1134_v18 = vadd.f32 %v1133_v11, %v4605_v13  ;;  %v1247_v63 = vadd.f32 %v1246_v12, %v4609_v15  ;;  %2398 = vmatpush2.bf16.msra.mxu1 %v3920_v14  ;;  %v1313_v19 = vmax.f32 %v1132_v58, 0.0  ;;  %v1315_v21 = vmax.f32 %v1245_v59, 0.0  ;;  %2511 = vmatpush2.bf16.msra.mxu0 %v3923_v56 }
 0x21b   :  { %v1137_v61 = vpop.f32.mrf.mxu1  ;;  %v1250_v9 = vpop.f32.mrf.mxu0  ;;  %2399 = vmatprep.subr.bf16.mxu1 %v3928_v57  ;;  %2512 = vmatprep.subr.bf16.mxu0 %v3931_v60  ;;  %v3935_v57 = vld [vmem:[%s5240_s4 + $0x3a8] ss:$16 sps:$4 sm:$0xff]  }
 0x21c   :  { %v1314_v31 = vmax.f32 %v1134_v18, 0.0  ;;  %v1316_v32 = vmax.f32 %v1247_v63, 0.0  ;;  %v4854_v14 = vpack.c.bf16 %v1313_v19, %v1309_v33  ;;  %v4856_v47 = vpack.c.bf16 %v1315_v21, %v1311_v34  ;;  %v3938_v19 = vld [vmem:[%s5240_s4 + $0x188] ss:$16 sps:$4 sm:$0xff]  }
 0x21d   :  { %v1139_v35 = vpop.f32.mrf.mxu1  ;;  %v1252_v36 = vpop.f32.mrf.mxu0  ;;  %v1138_v10 = vadd.f32 %v1137_v61, %v4613_v16  ;;  %v1251_v11 = vadd.f32 %v1250_v9, %v4617_v17 }
 0x21e   :  { %v4847_v38 = vpack.c.bf16 %v1316_v32, %v1312_v30  ;;  %2400 = vmatpush2.bf16.msra.mxu1 %v3926_v5  ;;  %v4849_v40 = vpack.c.bf16 %v1314_v31, %v1310_v29  ;;  %v1140_v48 = vadd.f32 %v1139_v35, %v4605_v13  ;;  %2513 = vmatpush2.bf16.msra.mxu0 %v3929_v23  ;;  %v3946_v29 = vld [vmem:[%s5240_s4 + $0x16c] ss:$16 sps:$4 sm:$0xff]  }
 0x21f   :  { %v1141_v52 = vpop.f32.mrf.mxu1  ;;  %v1254_v56 = vpop.f32.mrf.mxu0  ;;  %2401 = vmatprep.subr.bf16.mxu1 %v3934_v28  ;;  %v1253_v58 = vadd.f32 %v1252_v36, %v4609_v15  ;;  %2514 = vmatprep.subr.bf16.mxu0 %v3937_v37  ;;  %v3941_v28 = vld [vmem:[%s5240_s4 + $0x388] ss:$16 sps:$4 sm:$0xff]   ;;  %v1317_v34 = vmax.f32 %v1138_v10, 0.0  ;;  %v1319_v35 = vmax.f32 %v1251_v11, 0.0  ;;  %v3952_v10 = vld [vmem:[%s5240_s4 + $0x14c] ss:$16 sps:$4 sm:$0xff]  }
 0x220   :  { %v1142_v59 = vadd.f32 %v1141_v52, %v4613_v16  ;;  %v1255_v60 = vadd.f32 %v1254_v56, %v4617_v17  ;;  %2237 = vmatprep.mubr.bf16.mxu1 %v4849_v40  ;;  %2350 = vmatprep.mubr.bf16.mxu0 %v4847_v38  ;;  %v1318_v30 = vmax.f32 %v1140_v48, 0.0  ;;  %v3944_v48 = vld [vmem:[%s5240_s4 + $0x168] ss:$16 sps:$4 sm:$0xff]  }
 0x221   :  { %v1143_v12 = vpop.f32.mrf.mxu1  ;;  %v1256_v18 = vpop.f32.mrf.mxu0  ;;  %2238 = vmatmul.mubr.bf16.gmra.mxu1 %v4854_v14  ;;  %2351 = vmatmul.mubr.bf16.gmra.mxu0 %v4856_v47  ;;  %v1320_v31 = vmax.f32 %v1253_v58, 0.0 }
 0x222   :  { %v1144_v63 = vadd.f32 %v1143_v12, %v4605_v13  ;;  %v1257_v5 = vadd.f32 %v1256_v18, %v4609_v15  ;;  %2402 = vmatpush2.bf16.msra.mxu1 %v3932_v41  ;;  %v1321_v21 = vmax.f32 %v1142_v59, 0.0  ;;  %v1323_v61 = vmax.f32 %v1255_v60, 0.0  ;;  %2515 = vmatpush2.bf16.msra.mxu0 %v3935_v57  ;;  %v3949_v41 = vld [vmem:[%s5240_s4 + $0x36c] ss:$16 sps:$4 sm:$0xff]  }
 0x223   :  { %v1147_v9 = vpop.f32.mrf.mxu1  ;;  %v1260_v23 = vpop.f32.mrf.mxu0  ;;  %2403 = vmatprep.subr.bf16.mxu1 %v3940_v55  ;;  %2516 = vmatprep.subr.bf16.mxu0 %v3943_v51  ;;  %v3947_v51 = vld [vmem:[%s5240_s4 + $0x368] ss:$16 sps:$4 sm:$0xff]  }
 0x224   :  { %v1322_v32 = vmax.f32 %v1144_v63, 0.0  ;;  %v1324_v33 = vmax.f32 %v1257_v5, 0.0  ;;  %v4898_v57 = vpack.c.bf16 %v1321_v21, %v1317_v34  ;;  %v4900_v55 = vpack.c.bf16 %v1323_v61, %v1319_v35  ;;  %v3955_v63 = vld [vmem:[%s5240_s4 + $0x34c] ss:$16 sps:$4 sm:$0xff]  }
 0x225   :  { %v1149_v36 = vpop.f32.mrf.mxu1  ;;  %v1262_v37 = vpop.f32.mrf.mxu0  ;;  %v1148_v5 = vadd.f32 %v1147_v9, %v4613_v16  ;;  %v1261_v61 = vadd.f32 %v1260_v23, %v4617_v17  ;;  %v3953_v9 = vld [vmem:[%s5240_s4 + $0x348] ss:$16 sps:$4 sm:$0xff]   ;;  %v3961_v34 = vld [vmem:[%s5240_s4 + $0x32c] ss:$16 sps:$4 sm:$0xff]  }
 0x226   :  { %v4891_v52 = vpack.c.bf16 %v1322_v32, %v1318_v30  ;;  %v4893_v56 = vpack.c.bf16 %v1324_v33, %v1320_v31  ;;  %2404 = vmatpush2.bf16.msra.mxu1 %v3938_v19  ;;  %v1150_v58 = vadd.f32 %v1149_v36, %v4605_v13  ;;  %2517 = vmatpush2.bf16.msra.mxu0 %v3941_v28  ;;  %v3950_v30 = vld [vmem:[%s5240_s4 + $0x148] ss:$16 sps:$4 sm:$0xff]  }
 0x227   :  { %v1151_v59 = vpop.f32.mrf.mxu1  ;;  %v1264_v60 = vpop.f32.mrf.mxu0  ;;  %2405 = vmatprep.subr.bf16.mxu1 %v3946_v29  ;;  %v1263_v11 = vadd.f32 %v1262_v37, %v4609_v15  ;;  %2518 = vmatprep.subr.bf16.mxu0 %v3949_v41  ;;  %v1325_v33 = vmax.f32 %v1148_v5, 0.0  ;;  %v1327_v35 = vmax.f32 %v1261_v61, 0.0  ;;  %v3956_v41 = vld [vmem:[%s5240_s4 + $0x128] ss:$16 sps:$4 sm:$0xff]  }
 0x228   :  { %v1152_v12 = vadd.f32 %v1151_v59, %v4613_v16  ;;  %v1265_v18 = vadd.f32 %v1264_v60, %v4617_v17  ;;  %2247 = vmatprep.mubr.bf16.mxu1 %v4891_v52  ;;  %2360 = vmatprep.mubr.bf16.mxu0 %v4893_v56  ;;  %v1326_v31 = vmax.f32 %v1150_v58, 0.0  ;;  %v3959_v58 = vld [vmem:[%s5240_s4 + $0x328] ss:$16 sps:$4 sm:$0xff]   ;;  %v3964_v60 = vld [vmem:[%s5240_s4 + $0x10c] ss:$16 sps:$4 sm:$0xff]  }
 0x229   :  { %v1153_v19 = vpop.f32.mrf.mxu1  ;;  %v1266_v21 = vpop.f32.mrf.mxu0  ;;  %2248 = vmatmul.mubr.bf16.gmra.mxu1 %v4898_v57  ;;  %2361 = vmatmul.mubr.bf16.gmra.mxu0 %v4900_v55  ;;  %v3972_v5 = vld [vmem:[#allocation4 + $0x68] sm:$0xff]  }
 0x22a   :  { %v1154_v28 = vadd.f32 %v1153_v19, %v4605_v13  ;;  %v1267_v29 = vadd.f32 %v1266_v21, %v4609_v15  ;;  %2406 = vmatpush2.bf16.msra.mxu1 %v3944_v48  ;;  %v1329_v16 = vmax.f32 %v1152_v12, 0.0  ;;  %2519 = vmatpush2.bf16.msra.mxu0 %v3947_v51  ;;  %v3958_v13 = vld [vmem:[%s5240_s4 + $0x12c] ss:$16 sps:$4 sm:$0xff]   ;;  %v1328_v15 = vmax.f32 %v1263_v11, 0.0  ;;  %v3965_v11 = vld [vmem:[%s5240_s4 + $0x308] ss:$16 sps:$4 sm:$0xff]  }
 0x22b   :  { %2407 = vmatprep.subr.bf16.mxu1 %v3952_v10  ;;  %v1331_v17 = vmax.f32 %v1265_v18, 0.0  ;;  %2520 = vmatprep.subr.bf16.mxu0 %v3955_v63  ;;  %v3967_v51 = vld [vmem:[%s5240_s4 + $0x30c] ss:$16 sps:$4 sm:$0xff]   ;;  %v3962_v10 = vld [vmem:[%s5240_s4 + $0x108] ss:$16 sps:$4 sm:$0xff]   ;;  %v3970_v63 = vld [vmem:[#allocation4 + $0x70] sm:$0xff]  }
 0x22c   :  { %v1330_v23 = vmax.f32 %v1154_v28, 0.0  ;;  %v1332_v32 = vmax.f32 %v1267_v29, 0.0  ;;  %v4942_v48 = vpack.c.bf16 %v1329_v16, %v1325_v33  ;;  %v3968_v12 = vld [vmem:[#allocation4 + $0x78] sm:$0xff]   ;;  %v3974_v19 = vld [vmem:[#allocation4 + $0x60] sm:$0xff]  }
 0x22d   :  { %v4947_v59 = vpack.c.bf16 %v1331_v17, %v1327_v35  ;;  %v3969_v18 = vld [vmem:[#allocation4 + $0x38] sm:$0xff]  }
 0x22e   :  { %v4935_v36 = vpack.c.bf16 %v1330_v23, %v1326_v31  ;;  %v4937_v37 = vpack.c.bf16 %v1332_v32, %v1328_v15  ;;  %2408 = vmatpush2.bf16.msra.mxu1 %v3950_v30  ;;  %2521 = vmatpush2.bf16.msra.mxu0 %v3953_v9 }
 0x22f   :  { %2409 = vmatprep.subr.bf16.mxu1 %v3958_v13  ;;  %2522 = vmatprep.subr.bf16.mxu0 %v3961_v34 }
 0x230   :  { %2257 = vmatprep.mubr.bf16.mxu1 %v4935_v36  ;;  %2370 = vmatprep.mubr.bf16.mxu0 %v4937_v37 }
 0x231   :  { %2258 = vmatmul.mubr.bf16.gmra.mxu1 %v4942_v48  ;;  %2371 = vmatmul.mubr.bf16.gmra.mxu0 %v4947_v59 }
 0x232   :  { %2410 = vmatpush2.bf16.msra.mxu1 %v3956_v41  ;;  %2413 = vmatprep.mubr.bf16.mxu1 %v4627_v27  ;;  %v3971_v27 = vld [vmem:[#allocation4 + $0x30] sm:$0xff]  }
 0x233   :  { %2523 = vmatpush2.bf16.msra.mxu0 %v3959_v58  ;;  %2526 = vmatprep.mubr.bf16.mxu0 %v4629_v42  ;;  %v3973_v42 = vld [vmem:[#allocation4 + $0x28] sm:$0xff]  }
 0x234   :  { %2411 = vmatprep.subr.bf16.mxu1 %v3964_v60  ;;  %2524 = vmatprep.subr.bf16.mxu0 %v3967_v51 }
 0x236   :  { %2412 = vmatpush2.bf16.msra.mxu1 %v3962_v10 }
 0x237   :  { %2525 = vmatpush2.bf16.msra.mxu0 %v3965_v11  ;;  %3467 = vmatprep.subr.bf16.mxu1 %v3968_v12 }
 0x239   :  { %2414 = vmatmul.mubr.bf16.vlgmr.msra.gmra.mxu1 %v4637_v0  ;;  %v3975_v0 = vld [vmem:[#allocation4 + $0x20] sm:$0xff]  }
 0x23a   :  { %2527 = vmatmul.mubr.bf16.vlgmr.msra.gmra.mxu0 %v4639_v44  ;;  %2423 = vmatprep.mubr.bf16.mxu1 %v4671_v22  ;;  %v3976_v44 = vld [vmem:[#allocation4 + $0x58] sm:$0xff]  }
 0x23b   :  { %2536 = vmatprep.mubr.bf16.mxu0 %v4680_v26  ;;  %3468 = vmatpush3.bf16.msra.mxu1 %v3969_v18  ;;  %v3977_v22 = vld [vmem:[#allocation4 + $0x18] sm:$0xff]   ;;  %v3978_v26 = vld [vmem:[#allocation4 + $0x50] sm:$0xff]  }
 0x23c   :  { %3469 = vmatprep.subr.bf16.mxu1 %v3970_v63 }
 0x23f   :  { %3470 = vmatpush3.bf16.msra.mxu1 %v3971_v27 }
 0x240   :  { %3471 = vmatprep.subr.bf16.mxu1 %v3972_v5 }
 0x241   :  { %2424 = vmatmul.mubr.bf16.gmra.mxu1 %v4676_v24  ;;  %v3979_v24 = vld [vmem:[#allocation4 + $0x10] sm:$0xff]  }
 0x242   :  { %2537 = vmatmul.mubr.bf16.gmra.mxu0 %v4678_v25  ;;  %2433 = vmatprep.mubr.bf16.mxu1 %v4717_v1  ;;  %v3980_v25 = vld [vmem:[#allocation4 + $0x48] sm:$0xff]   ;;  %v3982_v1 = vld [vmem:[#allocation4 + $0x40] sm:$0xff]  }
 0x243   :  { %2546 = vmatprep.mubr.bf16.mxu0 %v4715_v62  ;;  %3472 = vmatpush3.bf16.msra.mxu1 %v3973_v42  ;;  %v3981_v62 = vld [vmem:[#allocation4 + $0x8] sm:$0xff]  }
 0x244   :  { %3473 = vmatprep.subr.bf16.mxu1 %v3974_v19 }
 0x247   :  { %3474 = vmatpush3.bf16.msra.mxu1 %v3975_v0 }
 0x248   :  { %3475 = vmatprep.subr.bf16.mxu1 %v3976_v44 }
 0x249   :  { %2434 = vmatmul.mubr.bf16.gmra.mxu1 %v4722_v2  ;;  %v3983_v2 = vld [vmem:[#allocation4] sm:$0xff]  }
 0x24a   :  { %2547 = vmatmul.mubr.bf16.gmra.mxu0 %v4724_v3  ;;  %2443 = vmatprep.mubr.bf16.mxu1 %v4761_v50  ;;  %v3984_v3 = vld [vmem:[#allocation4 + $0xf8] sm:$0xff]   ;;  %v4994_v50 = vld [vmem:[#allocation4 + $0xf0] sm:$0xff]  }
 0x24b   :  { %2556 = vmatprep.mubr.bf16.mxu0 %v4759_v49  ;;  %3476 = vmatpush3.bf16.msra.mxu1 %v3977_v22  ;;  %v4987_v49 = vld [vmem:[#allocation4 + $0xb8] sm:$0xff]  }
 0x24c   :  { %3477 = vmatprep.subr.bf16.mxu1 %v3978_v26  ;;  %3531 = vmatprep.subr.bf16.mxu0 %v3984_v3 }
 0x24d   :  { %3532 = vmatpush3.bf16.msra.mxu0 %v4987_v49 }
 0x24e   :  { %3533 = vmatprep.subr.bf16.mxu0 %v4994_v50 }
 0x24f   :  { %3478 = vmatpush3.bf16.msra.mxu1 %v3979_v24 }
 0x250   :  { %3479 = vmatprep.subr.bf16.mxu1 %v3980_v25 }
 0x251   :  { %2444 = vmatmul.mubr.bf16.gmra.mxu1 %v4766_v53  ;;  %v4996_v53 = vld [vmem:[#allocation4 + $0xb0] sm:$0xff]  }
 0x252   :  { %2557 = vmatmul.mubr.bf16.gmra.mxu0 %v4768_v54  ;;  %2453 = vmatprep.mubr.bf16.mxu1 %v4805_v43  ;;  %v5004_v54 = vld [vmem:[#allocation4 + $0xe8] sm:$0xff]   ;;  %v5012_v43 = vld [vmem:[#allocation4 + $0xe0] sm:$0xff]  }
 0x253   :  { %2566 = vmatprep.mubr.bf16.mxu0 %v4803_v20  ;;  %3480 = vmatpush3.bf16.msra.mxu1 %v3981_v62  ;;  %v5006_v20 = vld [vmem:[#allocation4 + $0xa8] sm:$0xff]  }
 0x254   :  { %3481 = vmatprep.subr.bf16.mxu1 %v3982_v1  ;;  %3534 = vmatpush3.bf16.msra.mxu0 %v4996_v53 }
 0x255   :  { %3535 = vmatprep.subr.bf16.mxu0 %v5004_v54 }
 0x257   :  { %3482 = vmatpush3.bf16.msra.mxu1 %v3983_v2 }
 0x258   :  { %3595 = vmatprep.subr.bf16.mxu1 %v3984_v3  ;;  %3536 = vmatpush3.bf16.msra.mxu0 %v5006_v20 }
 0x259   :  { %2454 = vmatmul.mubr.bf16.gmra.mxu1 %v4810_v45  ;;  %v5014_v45 = vld [vmem:[#allocation4 + $0xa0] sm:$0xff]   ;;  %3537 = vmatprep.subr.bf16.mxu0 %v5012_v43 }
 0x25a   :  { %2567 = vmatmul.mubr.bf16.gmra.mxu0 %v4812_v46  ;;  %2463 = vmatprep.mubr.bf16.mxu1 %v4849_v40  ;;  %v5018_v46 = vld [vmem:[#allocation4 + $0xd8] sm:$0xff]   ;;  %v5024_v40 = vld [vmem:[#allocation4 + $0xd0] sm:$0xff]  }
 0x25b   :  { %2576 = vmatprep.mubr.bf16.mxu0 %v4847_v38  ;;  %v5020_v38 = vld [vmem:[#allocation4 + $0x98] sm:$0xff]  }
 0x25c   :  { %3538 = vmatpush3.bf16.msra.mxu0 %v5014_v45 }
 0x25d   :  { %3539 = vmatprep.subr.bf16.mxu0 %v5018_v46 }
 0x260   :  { %3540 = vmatpush3.bf16.msra.mxu0 %v5020_v38 }
 0x261   :  { %2464 = vmatmul.mubr.bf16.gmra.mxu1 %v4854_v14  ;;  %v5026_v14 = vld [vmem:[#allocation4 + $0x90] sm:$0xff]   ;;  %3541 = vmatprep.subr.bf16.mxu0 %v5024_v40 }
 0x262   :  { %2577 = vmatmul.mubr.bf16.gmra.mxu0 %v4856_v47  ;;  %2473 = vmatprep.mubr.bf16.mxu1 %v4891_v52  ;;  %v5030_v47 = vld [vmem:[#allocation4 + $0xc8] sm:$0xff]  }
 0x263   :  { %2586 = vmatprep.mubr.bf16.mxu0 %v4893_v56  ;;  %v5032_v52 = vld [vmem:[#allocation4 + $0x88] sm:$0xff]   ;;  %v5036_v56 = vld [vmem:[#allocation4 + $0xc0] sm:$0xff]  }
 0x264   :  { %3542 = vmatpush3.bf16.msra.mxu0 %v5026_v14 }
 0x265   :  { %3543 = vmatprep.subr.bf16.mxu0 %v5030_v47 }
 0x268   :  { %3544 = vmatpush3.bf16.msra.mxu0 %v5032_v52 }
 0x269   :  { %2474 = vmatmul.mubr.bf16.gmra.mxu1 %v4898_v57  ;;  %v5038_v57 = vld [vmem:[#allocation4 + $0x80] sm:$0xff]   ;;  %3545 = vmatprep.subr.bf16.mxu0 %v5036_v56 }
 0x26a   :  { %2587 = vmatmul.mubr.bf16.gmra.mxu0 %v4900_v55  ;;  %2483 = vmatprep.mubr.bf16.mxu1 %v4935_v36  ;;  %v5045_v55 = vld [vmem:[%s5241_s5] sm:$0xf] }
 0x26b   :  { %2596 = vmatprep.mubr.bf16.mxu0 %v4937_v37  ;;  %v5050_v21 = vrot.slane %v5045_v55, %v824_v39  ;;  %v5055_v61 = vrot.slane %v5045_v55, %v820_v7 }
 0x26c   :  { %3546 = vmatpush3.bf16.msra.mxu0 %v5038_v57 }
 0x271   :  { %2484 = vmatmul.mubr.bf16.gmra.mxu1 %v4942_v48 }
 0x272   :  { %2597 = vmatmul.mubr.bf16.gmra.mxu0 %v4947_v59 }
 0x2b9   :  { %v2189_v28 = vpop.f32.mrf.mxu1  ;;  %v2302_v29 = vpop.f32.mrf.mxu0 }
 0x2ba   :  { %v2190_v9 = vadd.f32 %v2189_v28, %v5055_v61 }
 0x2bb   :  { %v2191_v30 = vpop.f32.mrf.mxu1  ;;  %v2304_v31 = vpop.f32.mrf.mxu0 }
 0x2bc   :  { %v2192_v16 = vadd.f32 %v2191_v30, %v5050_v21  ;;  %v2303_v7 = vadd.f32 %v2302_v29, %v2190_v9 }
 0x2bd   :  { %v2193_v13 = vpop.f32.mrf.mxu1  ;;  %v2306_v15 = vpop.f32.mrf.mxu0 }
 0x2be   :  { %v2194_v17 = vadd.f32 %v2193_v13, %v5055_v61  ;;  %v2305_v32 = vadd.f32 %v2304_v31, %v2192_v16  ;;  %v2607_v10 = vmax.f32 %v2303_v7, 0.0 }
 0x2bf   :  { %v2195_v23 = vpop.f32.mrf.mxu1  ;;  %v2308_v39 = vpop.f32.mrf.mxu0 }
 0x2c0   :  { %v2307_v33 = vadd.f32 %v2306_v15, %v2194_v17  ;;  %v2196_v34 = vadd.f32 %v2195_v23, %v5050_v21  ;;  %v2608_v58 = vmax.f32 %v2305_v32, 0.0 }
 0x2c1   :  { %v2199_v35 = vpop.f32.mrf.mxu1  ;;  %v2312_v37 = vpop.f32.mrf.mxu0 }
 0x2c2   :  { %v2309_v36 = vadd.f32 %v2308_v39, %v2196_v34  ;;  %v2611_v41 = vmax.f32 %v2307_v33, 0.0  ;;  %v2200_v11 = vadd.f32 %v2199_v35, %v5055_v61 }
 0x2c3   :  { %v2201_v48 = vpop.f32.mrf.mxu1  ;;  %v2314_v51 = vpop.f32.mrf.mxu0 }
 0x2c4   :  { %v2612_v59 = vmax.f32 %v2309_v36, 0.0  ;;  %v2202_v60 = vadd.f32 %v2201_v48, %v5050_v21  ;;  %v2671_v5 = vpack.c.bf16 %v2611_v41, %v2607_v10  ;;  %v2313_v26 = vadd.f32 %v2312_v37, %v2200_v11 }
 0x2c5   :  { %v2203_v12 = vpop.f32.mrf.mxu1  ;;  %v2316_v27 = vpop.f32.mrf.mxu0 }
 0x2c6   :  { %v2672_v18 = vpack.c.bf16 %v2612_v59, %v2608_v58  ;;  %v2204_v63 = vadd.f32 %v2203_v12, %v5055_v61  ;;  %v2315_v19 = vadd.f32 %v2314_v51, %v2202_v60  ;;  %v2615_v31 = vmax.f32 %v2313_v26, 0.0 }
 0x2c7   :  { %v2205_v42 = vpop.f32.mrf.mxu1  ;;  %v2318_v22 = vpop.f32.mrf.mxu0 }
 0x2c8   :  { %v2317_v0 = vadd.f32 %v2316_v27, %v2204_v63  ;;  %v2206_v44 = vadd.f32 %v2205_v42, %v5050_v21  ;;  %2998 = vmatprep.mubr.bf16.mxu1 %v2672_v18  ;;  %v2616_v3 = vmax.f32 %v2315_v19, 0.0 }
 0x2c9   :  { %v2209_v24 = vpop.f32.mrf.mxu1  ;;  %2999 = vmatmul.mubr.bf16.vlgmr.msra.gmra.mxu1 %v2671_v5  ;;  %v2322_v62 = vpop.f32.mrf.mxu0 }
 0x2ca   :  { %v2319_v25 = vadd.f32 %v2318_v22, %v2206_v44  ;;  %3603 = vmatpush3.bf16.msra.mxu1 %v4987_v49  ;;  %v2619_v1 = vmax.f32 %v2317_v0, 0.0  ;;  %v2210_v16 = vadd.f32 %v2209_v24, %v5055_v61 }
 0x2cb   :  { %v2211_v2 = vpop.f32.mrf.mxu1  ;;  %3596 = vmatprep.subr.bf16.mxu1 %v4994_v50  ;;  %v2324_v30 = vpop.f32.mrf.mxu0 }
 0x2cc   :  { %v2620_v28 = vmax.f32 %v2319_v25, 0.0  ;;  %v2212_v29 = vadd.f32 %v2211_v2, %v5050_v21  ;;  %v2675_v49 = vpack.c.bf16 %v2619_v1, %v2615_v31  ;;  %v2323_v34 = vadd.f32 %v2322_v62, %v2210_v16 }
 0x2cd   :  { %v2213_v9 = vpop.f32.mrf.mxu1  ;;  %v2326_v17 = vpop.f32.mrf.mxu0 }
 0x2ce   :  { %v2676_v13 = vpack.c.bf16 %v2620_v28, %v2616_v3  ;;  %v2214_v15 = vadd.f32 %v2213_v9, %v5055_v61  ;;  %3604 = vmatpush3.bf16.msra.mxu1 %v4996_v53  ;;  %v2325_v50 = vadd.f32 %v2324_v30, %v2212_v29  ;;  %v2623_v59 = vmax.f32 %v2323_v34, 0.0 }
 0x2cf   :  { %v2215_v23 = vpop.f32.mrf.mxu1  ;;  %3597 = vmatprep.subr.bf16.mxu1 %v5004_v54  ;;  %v2328_v33 = vpop.f32.mrf.mxu0 }
 0x2d0   :  { %v2327_v39 = vadd.f32 %v2326_v17, %v2214_v15  ;;  %v2216_v32 = vadd.f32 %v2215_v23, %v5050_v21  ;;  %3006 = vmatprep.mubr.bf16.mxu1 %v2676_v13  ;;  %v2624_v53 = vmax.f32 %v2325_v50, 0.0 }
 0x2d1   :  { %v2219_v7 = vpop.f32.mrf.mxu1  ;;  %3007 = vmatmul.mubr.bf16.gmra.mxu1 %v2675_v49  ;;  %v2332_v36 = vpop.f32.mrf.mxu0 }
 0x2d2   :  { %v2329_v35 = vadd.f32 %v2328_v33, %v2216_v32  ;;  %3605 = vmatpush3.bf16.msra.mxu1 %v5006_v20  ;;  %v2627_v37 = vmax.f32 %v2327_v39, 0.0  ;;  %v2220_v60 = vadd.f32 %v2219_v7, %v5055_v61 }
 0x2d3   :  { %v2221_v41 = vpop.f32.mrf.mxu1  ;;  %3598 = vmatprep.subr.bf16.mxu1 %v5012_v43  ;;  %v2334_v58 = vpop.f32.mrf.mxu0 }
 0x2d4   :  { %v2628_v48 = vmax.f32 %v2329_v35, 0.0  ;;  %v2222_v54 = vadd.f32 %v2221_v41, %v5050_v21  ;;  %v2679_v20 = vpack.c.bf16 %v2627_v37, %v2623_v59  ;;  %v2333_v42 = vadd.f32 %v2332_v36, %v2220_v60 }
 0x2d5   :  { %v2223_v51 = vpop.f32.mrf.mxu1  ;;  %v2336_v12 = vpop.f32.mrf.mxu0 }
 0x2d6   :  { %v2680_v10 = vpack.c.bf16 %v2628_v48, %v2624_v53  ;;  %v2224_v11 = vadd.f32 %v2223_v51, %v5055_v61  ;;  %3606 = vmatpush3.bf16.msra.mxu1 %v5014_v45  ;;  %v2335_v43 = vadd.f32 %v2334_v58, %v2222_v54  ;;  %v2631_v62 = vmax.f32 %v2333_v42, 0.0 }
 0x2d7   :  { %v2225_v18 = vpop.f32.mrf.mxu1  ;;  %3599 = vmatprep.subr.bf16.mxu1 %v5018_v46  ;;  %v2338_v5 = vpop.f32.mrf.mxu0 }
 0x2d8   :  { %v2337_v63 = vadd.f32 %v2336_v12, %v2224_v11  ;;  %v2226_v27 = vadd.f32 %v2225_v18, %v5050_v21  ;;  %3014 = vmatprep.mubr.bf16.mxu1 %v2680_v10  ;;  %v2632_v45 = vmax.f32 %v2335_v43, 0.0 }
 0x2d9   :  { %v2229_v19 = vpop.f32.mrf.mxu1  ;;  %3015 = vmatmul.mubr.bf16.gmra.mxu1 %v2679_v20  ;;  %v2342_v44 = vpop.f32.mrf.mxu0 }
 0x2da   :  { %v2339_v0 = vadd.f32 %v2338_v5, %v2226_v27  ;;  %3607 = vmatpush3.bf16.msra.mxu1 %v5020_v38  ;;  %v2635_v22 = vmax.f32 %v2337_v63, 0.0  ;;  %v2230_v1 = vadd.f32 %v2229_v19, %v5055_v61 }
 0x2db   :  { %v2231_v26 = vpop.f32.mrf.mxu1  ;;  %3600 = vmatprep.subr.bf16.mxu1 %v5024_v40  ;;  %v2344_v25 = vpop.f32.mrf.mxu0 }
 0x2dc   :  { %v2636_v24 = vmax.f32 %v2339_v0, 0.0  ;;  %v2232_v46 = vadd.f32 %v2231_v26, %v5050_v21  ;;  %v2683_v38 = vpack.c.bf16 %v2635_v22, %v2631_v62  ;;  %v2343_v13 = vadd.f32 %v2342_v44, %v2230_v1 }
 0x2dd   :  { %v2233_v2 = vpop.f32.mrf.mxu1  ;;  %v2346_v29 = vpop.f32.mrf.mxu0 }
 0x2de   :  { %v2684_v3 = vpack.c.bf16 %v2636_v24, %v2632_v45  ;;  %v2234_v28 = vadd.f32 %v2233_v2, %v5055_v61  ;;  %3608 = vmatpush3.bf16.msra.mxu1 %v5026_v14  ;;  %v2345_v40 = vadd.f32 %v2344_v25, %v2232_v46  ;;  %v2639_v33 = vmax.f32 %v2343_v13, 0.0 }
 0x2df   :  { %v2235_v30 = vpop.f32.mrf.mxu1  ;;  %3601 = vmatprep.subr.bf16.mxu1 %v5030_v47  ;;  %v2348_v9 = vpop.f32.mrf.mxu0 }
 0x2e0   :  { %v2347_v31 = vadd.f32 %v2346_v29, %v2234_v28  ;;  %v2236_v16 = vadd.f32 %v2235_v30, %v5050_v21  ;;  %3022 = vmatprep.mubr.bf16.mxu1 %v2684_v3  ;;  %v2640_v14 = vmax.f32 %v2345_v40, 0.0 }
 0x2e1   :  { %v2239_v15 = vpop.f32.mrf.mxu1  ;;  %3023 = vmatmul.mubr.bf16.gmra.mxu1 %v2683_v38  ;;  %v2352_v49 = vpop.f32.mrf.mxu0 }
 0x2e2   :  { %v2349_v17 = vadd.f32 %v2348_v9, %v2236_v16  ;;  %3609 = vmatpush3.bf16.msra.mxu1 %v5032_v52  ;;  %v2643_v23 = vmax.f32 %v2347_v31, 0.0  ;;  %v2240_v34 = vadd.f32 %v2239_v15, %v5055_v61 }
 0x2e3   :  { %v2241_v50 = vpop.f32.mrf.mxu1  ;;  %3602 = vmatprep.subr.bf16.mxu1 %v5036_v56  ;;  %v2354_v32 = vpop.f32.mrf.mxu0 }
 0x2e4   :  { %v2644_v39 = vmax.f32 %v2349_v17, 0.0  ;;  %v2242_v47 = vadd.f32 %v2241_v50, %v5050_v21  ;;  %v2687_v52 = vpack.c.bf16 %v2643_v23, %v2639_v33  ;;  %v2353_v58 = vadd.f32 %v2352_v49, %v2240_v34 }
 0x2e5   :  { %v2243_v7 = vpop.f32.mrf.mxu1  ;;  %v2356_v37 = vpop.f32.mrf.mxu0  ;;  %v5112_v33 = vrot.slane %v5045_v55, %v828_v8 }
 0x2e6   :  { %v2688_v35 = vpack.c.bf16 %v2644_v39, %v2640_v14  ;;  %v2244_v36 = vadd.f32 %v2243_v7, %v5055_v61  ;;  %3610 = vmatpush3.bf16.msra.mxu1 %v5038_v57  ;;  %v2355_v53 = vadd.f32 %v2354_v32, %v2242_v47  ;;  %v2647_v43 = vmax.f32 %v2353_v58, 0.0 }
 0x2e7   :  { %v2245_v41 = vpop.f32.mrf.mxu1  ;;  %v2358_v54 = vpop.f32.mrf.mxu0  ;;  %v5107_v47 = vrot.slane %v5045_v55, %v832_v6 }
 0x2e8   :  { %v2357_v48 = vadd.f32 %v2356_v37, %v2244_v36  ;;  %v2246_v56 = vadd.f32 %v2245_v41, %v5050_v21  ;;  %3030 = vmatprep.mubr.bf16.mxu1 %v2688_v35  ;;  %v2648_v12 = vmax.f32 %v2355_v53, 0.0 }
 0x2e9   :  { %v2249_v59 = vpop.f32.mrf.mxu1  ;;  %3031 = vmatmul.mubr.bf16.gmra.mxu1 %v2687_v52  ;;  %v2362_v51 = vpop.f32.mrf.mxu0 }
 0x2ea   :  { %v2359_v60 = vadd.f32 %v2358_v54, %v2246_v56  ;;  %v2651_v10 = vmax.f32 %v2357_v48, 0.0  ;;  %v2250_v63 = vadd.f32 %v2249_v59, %v5055_v61 }
 0x2eb   :  { %v2251_v11 = vpop.f32.mrf.mxu1  ;;  %v2364_v57 = vpop.f32.mrf.mxu0 }
 0x2ec   :  { %v2652_v20 = vmax.f32 %v2359_v60, 0.0  ;;  %v2252_v18 = vadd.f32 %v2251_v11, %v5050_v21  ;;  %v2691_v0 = vpack.c.bf16 %v2651_v10, %v2647_v43  ;;  %v2363_v46 = vadd.f32 %v2362_v51, %v2250_v63 }
 0x2ed   :  { %v2253_v27 = vpop.f32.mrf.mxu1  ;;  %v2366_v19 = vpop.f32.mrf.mxu0 }
 0x2ee   :  { %v2692_v5 = vpack.c.bf16 %v2652_v20, %v2648_v12  ;;  %v2254_v42 = vadd.f32 %v2253_v27, %v5055_v61  ;;  %v2365_v22 = vadd.f32 %v2364_v57, %v2252_v18  ;;  %v2655_v40 = vmax.f32 %v2363_v46, 0.0 }
 0x2ef   :  { %v2255_v44 = vpop.f32.mrf.mxu1  ;;  %v2368_v24 = vpop.f32.mrf.mxu0 }
 0x2f0   :  { %v2367_v26 = vadd.f32 %v2366_v19, %v2254_v42  ;;  %v2256_v45 = vadd.f32 %v2255_v44, %v5050_v21  ;;  %3038 = vmatprep.mubr.bf16.mxu1 %v2692_v5  ;;  %v2656_v28 = vmax.f32 %v2365_v22, 0.0 }
 0x2f1   :  { %v2259_v25 = vpop.f32.mrf.mxu1  ;;  %3039 = vmatmul.mubr.bf16.gmra.mxu1 %v2691_v0  ;;  %v2372_v1 = vpop.f32.mrf.mxu0 }
 0x2f2   :  { %v2369_v62 = vadd.f32 %v2368_v24, %v2256_v45  ;;  %v2659_v2 = vmax.f32 %v2367_v26, 0.0  ;;  %v2260_v31 = vadd.f32 %v2259_v25, %v5055_v61 }
 0x2f3   :  { %v2261_v3 = vpop.f32.mrf.mxu1  ;;  %v2374_v30 = vpop.f32.mrf.mxu0 }
 0x2f4   :  { %v2660_v29 = vmax.f32 %v2369_v62, 0.0  ;;  %v2262_v38 = vadd.f32 %v2261_v3, %v5050_v21  ;;  %v2695_v17 = vpack.c.bf16 %v2659_v2, %v2655_v40  ;;  %v2373_v32 = vadd.f32 %v2372_v1, %v2260_v31 }
 0x2f5   :  { %v2263_v16 = vpop.f32.mrf.mxu1  ;;  %v2376_v15 = vpop.f32.mrf.mxu0 }
 0x2f6   :  { %v2696_v9 = vpack.c.bf16 %v2660_v29, %v2656_v28  ;;  %v2264_v13 = vadd.f32 %v2263_v16, %v5055_v61  ;;  %v2375_v23 = vadd.f32 %v2374_v30, %v2262_v38  ;;  %v2663_v53 = vmax.f32 %v2373_v32, 0.0 }
 0x2f7   :  { %v2265_v49 = vpop.f32.mrf.mxu1  ;;  %v2378_v39 = vpop.f32.mrf.mxu0 }
 0x2f8   :  { %v2377_v50 = vadd.f32 %v2376_v15, %v2264_v13  ;;  %v2266_v14 = vadd.f32 %v2265_v49, %v5050_v21  ;;  %3046 = vmatprep.mubr.bf16.mxu1 %v2696_v9  ;;  %v2664_v21 = vmax.f32 %v2375_v23, 0.0 }
 0x2f9   :  { %v2415_v61 = vpop.f32.mrf.mxu1  ;;  %3047 = vmatmul.mubr.bf16.gmra.mxu1 %v2695_v17 }
 0x2fa   :  { %v2379_v34 = vadd.f32 %v2378_v39, %v2266_v14  ;;  %v2528_v7 = vpop.f32.mrf.mxu0  ;;  %v2667_v35 = vmax.f32 %v2377_v50, 0.0  ;;  %v2416_v6 = vadd.f32 %v2415_v61, %v5112_v33 }
 0x2fb   :  { %v2417_v36 = vpop.f32.mrf.mxu1 }
 0x2fc   :  { %v2668_v37 = vmax.f32 %v2379_v34, 0.0  ;;  %v2418_v52 = vadd.f32 %v2417_v36, %v5107_v47  ;;  %v2530_v41 = vpop.f32.mrf.mxu0  ;;  %v2699_v55 = vpack.c.bf16 %v2667_v35, %v2663_v53  ;;  %v2529_v10 = vadd.f32 %v2528_v7, %v2416_v6 }
 0x2fd   :  { %v2419_v48 = vpop.f32.mrf.mxu1 }
 0x2fe   :  { %v2700_v56 = vpack.c.bf16 %v2668_v37, %v2664_v21  ;;  %v2420_v4 = vadd.f32 %v2419_v48, %v5112_v33  ;;  %v2532_v8 = vpop.f32.mrf.mxu0  ;;  %v2531_v58 = vadd.f32 %v2530_v41, %v2418_v52  ;;  %v2609_v42 = vmax.f32 %v2529_v10, 0.0 }
 0x2ff   :  { %v2421_v54 = vpop.f32.mrf.mxu1 }
 0x300   :  { %v2533_v59 = vadd.f32 %v2532_v8, %v2420_v4  ;;  %v2422_v60 = vadd.f32 %v2421_v54, %v5107_v47  ;;  %v2534_v51 = vpop.f32.mrf.mxu0  ;;  %3054 = vmatprep.mubr.bf16.mxu1 %v2700_v56  ;;  %v2610_v43 = vmax.f32 %v2531_v58, 0.0 }
 0x301   :  { %v2425_v11 = vpop.f32.mrf.mxu1  ;;  %3055 = vmatmul.mubr.bf16.gmra.mxu1 %v2699_v55 }
 0x302   :  { %v2535_v12 = vadd.f32 %v2534_v51, %v2422_v60  ;;  %v2538_v20 = vpop.f32.mrf.mxu0  ;;  %v2613_v18 = vmax.f32 %v2533_v59, 0.0  ;;  %v2426_v19 = vadd.f32 %v2425_v11, %v5112_v33 }
 0x303   :  { %v2427_v57 = vpop.f32.mrf.mxu1 }
 0x304   :  { %v2614_v63 = vmax.f32 %v2535_v12, 0.0  ;;  %v2428_v27 = vadd.f32 %v2427_v57, %v5107_v47  ;;  %v2540_v5 = vpop.f32.mrf.mxu0  ;;  %v2673_v45 = vpack.c.bf16 %v2613_v18, %v2609_v42  ;;  %v2539_v2 = vadd.f32 %v2538_v20, %v2426_v19 }
 0x305   :  { %v2429_v0 = vpop.f32.mrf.mxu1 }
 0x306   :  { %v2674_v44 = vpack.c.bf16 %v2614_v63, %v2610_v43  ;;  %v2430_v22 = vadd.f32 %v2429_v0, %v5112_v33  ;;  %v2542_v26 = vpop.f32.mrf.mxu0  ;;  %v2541_v46 = vadd.f32 %v2540_v5, %v2428_v27  ;;  %v2617_v13 = vmax.f32 %v2539_v2, 0.0 }
 0x307   :  { %v2431_v24 = vpop.f32.mrf.mxu1 }
 0x308   :  { %v2543_v25 = vadd.f32 %v2542_v26, %v2430_v22  ;;  %v2432_v62 = vadd.f32 %v2431_v24, %v5107_v47  ;;  %v2544_v1 = vpop.f32.mrf.mxu0  ;;  %3095 = vmatprep.mubr.bf16.mxu0 %v2674_v44  ;;  %v2618_v40 = vmax.f32 %v2541_v46, 0.0 }
 0x309   :  { %v2435_v3 = vpop.f32.mrf.mxu1  ;;  %3096 = vmatmul.mubr.bf16.vlgmr.msra.gmra.mxu0 %v2673_v45 }
 0x30a   :  { %v2545_v28 = vadd.f32 %v2544_v1, %v2432_v62  ;;  %v2548_v29 = vpop.f32.mrf.mxu0  ;;  %v2621_v38 = vmax.f32 %v2543_v25, 0.0  ;;  %v2436_v15 = vadd.f32 %v2435_v3, %v5112_v33 }
 0x30b   :  { %v2437_v30 = vpop.f32.mrf.mxu1 }
 0x30c   :  { %v2622_v31 = vmax.f32 %v2545_v28, 0.0  ;;  %v2438_v16 = vadd.f32 %v2437_v30, %v5107_v47  ;;  %v2550_v9 = vpop.f32.mrf.mxu0  ;;  %v2677_v14 = vpack.c.bf16 %v2621_v38, %v2617_v13  ;;  %v2549_v35 = vadd.f32 %v2548_v29, %v2436_v15 }
 0x30d   :  { %v2439_v17 = vpop.f32.mrf.mxu1 }
 0x30e   :  { %v2678_v49 = vpack.c.bf16 %v2622_v31, %v2618_v40  ;;  %v2440_v23 = vadd.f32 %v2439_v17, %v5112_v33  ;;  %v2552_v50 = vpop.f32.mrf.mxu0  ;;  %v2551_v32 = vadd.f32 %v2550_v9, %v2438_v16  ;;  %v2625_v4 = vmax.f32 %v2549_v35, 0.0 }
 0x30f   :  { %v2441_v39 = vpop.f32.mrf.mxu1 }
 0x310   :  { %v2553_v61 = vadd.f32 %v2552_v50, %v2440_v23  ;;  %v2442_v34 = vadd.f32 %v2441_v39, %v5107_v47  ;;  %v2554_v7 = vpop.f32.mrf.mxu0  ;;  %3103 = vmatprep.mubr.bf16.mxu0 %v2678_v49  ;;  %v2626_v53 = vmax.f32 %v2551_v32, 0.0 }
 0x311   :  { %v2445_v36 = vpop.f32.mrf.mxu1  ;;  %3104 = vmatmul.mubr.bf16.gmra.mxu0 %v2677_v14 }
 0x312   :  { %v2555_v21 = vadd.f32 %v2554_v7, %v2442_v34  ;;  %v2558_v37 = vpop.f32.mrf.mxu0  ;;  %v2629_v52 = vmax.f32 %v2553_v61, 0.0  ;;  %v2446_v8 = vadd.f32 %v2445_v36, %v5112_v33 }
 0x313   :  { %v2447_v41 = vpop.f32.mrf.mxu1 }
 0x314   :  { %v2630_v6 = vmax.f32 %v2555_v21, 0.0  ;;  %v2448_v48 = vadd.f32 %v2447_v41, %v5107_v47  ;;  %v2560_v56 = vpop.f32.mrf.mxu0  ;;  %v2681_v60 = vpack.c.bf16 %v2629_v52, %v2625_v4  ;;  %v2559_v18 = vadd.f32 %v2558_v37, %v2446_v8 }
 0x315   :  { %v2449_v55 = vpop.f32.mrf.mxu1 }
 0x316   :  { %v2682_v54 = vpack.c.bf16 %v2630_v6, %v2626_v53  ;;  %v2450_v58 = vadd.f32 %v2449_v55, %v5112_v33  ;;  %v2562_v59 = vpop.f32.mrf.mxu0  ;;  %v2561_v10 = vadd.f32 %v2560_v56, %v2448_v48  ;;  %v2633_v22 = vmax.f32 %v2559_v18, 0.0 }
 0x317   :  { %v2451_v51 = vpop.f32.mrf.mxu1 }
 0x318   :  { %v2563_v11 = vadd.f32 %v2562_v59, %v2450_v58  ;;  %v2452_v12 = vadd.f32 %v2451_v51, %v5107_v47  ;;  %v2564_v20 = vpop.f32.mrf.mxu0  ;;  %3111 = vmatprep.mubr.bf16.mxu0 %v2682_v54  ;;  %v2634_v42 = vmax.f32 %v2561_v10, 0.0 }
 0x319   :  { %v2455_v57 = vpop.f32.mrf.mxu1  ;;  %3112 = vmatmul.mubr.bf16.gmra.mxu0 %v2681_v60 }
 0x31a   :  { %v2565_v43 = vadd.f32 %v2564_v20, %v2452_v12  ;;  %v2568_v63 = vpop.f32.mrf.mxu0  ;;  %v2637_v27 = vmax.f32 %v2563_v11, 0.0  ;;  %v2456_v26 = vadd.f32 %v2455_v57, %v5112_v33 }
 0x31b   :  { %v2457_v5 = vpop.f32.mrf.mxu1 }
 0x31c   :  { %v2638_v19 = vmax.f32 %v2565_v43, 0.0  ;;  %v2458_v0 = vadd.f32 %v2457_v5, %v5107_v47  ;;  %v2570_v44 = vpop.f32.mrf.mxu0  ;;  %v2685_v62 = vpack.c.bf16 %v2637_v27, %v2633_v22  ;;  %v2569_v38 = vadd.f32 %v2568_v63, %v2456_v26 }
 0x31d   :  { %v2459_v45 = vpop.f32.mrf.mxu1 }
 0x31e   :  { %v2686_v24 = vpack.c.bf16 %v2638_v19, %v2634_v42  ;;  %v2460_v46 = vadd.f32 %v2459_v45, %v5112_v33  ;;  %v2572_v25 = vpop.f32.mrf.mxu0  ;;  %v2571_v2 = vadd.f32 %v2570_v44, %v2458_v0  ;;  %v2641_v23 = vmax.f32 %v2569_v38, 0.0 }
 0x31f   :  { %v2461_v1 = vpop.f32.mrf.mxu1 }
 0x320   :  { %v2573_v3 = vadd.f32 %v2572_v25, %v2460_v46  ;;  %v2462_v28 = vadd.f32 %v2461_v1, %v5107_v47  ;;  %v2574_v29 = vpop.f32.mrf.mxu0  ;;  %3119 = vmatprep.mubr.bf16.mxu0 %v2686_v24  ;;  %v2642_v13 = vmax.f32 %v2571_v2, 0.0 }
 0x321   :  { %v2465_v30 = vpop.f32.mrf.mxu1  ;;  %3120 = vmatmul.mubr.bf16.gmra.mxu0 %v2685_v62 }
 0x322   :  { %v2575_v40 = vadd.f32 %v2574_v29, %v2462_v28  ;;  %v2578_v31 = vpop.f32.mrf.mxu0  ;;  %v2645_v16 = vmax.f32 %v2573_v3, 0.0  ;;  %v2466_v50 = vadd.f32 %v2465_v30, %v5112_v33 }
 0x323   :  { %v2467_v9 = vpop.f32.mrf.mxu1 }
 0x324   :  { %v2646_v15 = vmax.f32 %v2575_v40, 0.0  ;;  %v2468_v17 = vadd.f32 %v2467_v9, %v5107_v47  ;;  %v2580_v49 = vpop.f32.mrf.mxu0  ;;  %v2689_v34 = vpack.c.bf16 %v2645_v16, %v2641_v23  ;;  %v2579_v52 = vadd.f32 %v2578_v31, %v2466_v50 }
 0x325   :  { %v2469_v14 = vpop.f32.mrf.mxu1 }
 0x326   :  { %v2690_v39 = vpack.c.bf16 %v2646_v15, %v2642_v13  ;;  %v2470_v32 = vadd.f32 %v2469_v14, %v5112_v33  ;;  %v2582_v61 = vpop.f32.mrf.mxu0  ;;  %v2581_v35 = vadd.f32 %v2580_v49, %v2468_v17  ;;  %v2649_v58 = vmax.f32 %v2579_v52, 0.0 }
 0x327   :  { %v2471_v7 = vpop.f32.mrf.mxu1 }
 0x328   :  { %v2583_v36 = vadd.f32 %v2582_v61, %v2470_v32  ;;  %v2472_v21 = vadd.f32 %v2471_v7, %v5107_v47  ;;  %v2584_v37 = vpop.f32.mrf.mxu0  ;;  %3127 = vmatprep.mubr.bf16.mxu0 %v2690_v39  ;;  %v2650_v4 = vmax.f32 %v2581_v35, 0.0 }
 0x329   :  { %v2475_v41 = vpop.f32.mrf.mxu1  ;;  %3128 = vmatmul.mubr.bf16.gmra.mxu0 %v2689_v34 }
 0x32a   :  { %v2585_v53 = vadd.f32 %v2584_v37, %v2472_v21  ;;  %v2588_v6 = vpop.f32.mrf.mxu0  ;;  %v2653_v48 = vmax.f32 %v2583_v36, 0.0  ;;  %v2476_v59 = vadd.f32 %v2475_v41, %v5112_v33 }
 0x32b   :  { %v2477_v56 = vpop.f32.mrf.mxu1 }
 0x32c   :  { %v2654_v8 = vmax.f32 %v2585_v53, 0.0  ;;  %v2478_v55 = vadd.f32 %v2477_v56, %v5107_v47  ;;  %v2590_v54 = vpop.f32.mrf.mxu0  ;;  %v2693_v12 = vpack.c.bf16 %v2653_v48, %v2649_v58  ;;  %v2589_v27 = vadd.f32 %v2588_v6, %v2476_v59 }
 0x32d   :  { %v2479_v60 = vpop.f32.mrf.mxu1 }
 0x32e   :  { %v2694_v51 = vpack.c.bf16 %v2654_v8, %v2650_v4  ;;  %v2480_v10 = vadd.f32 %v2479_v60, %v5112_v33  ;;  %v2592_v11 = vpop.f32.mrf.mxu0  ;;  %v2591_v18 = vadd.f32 %v2590_v54, %v2478_v55  ;;  %v2657_v46 = vmax.f32 %v2589_v27, 0.0  ;;  %v5157_v54 = vld [vmem:[%s5243_s7] ss:$0 sm:$0xff] }
 0x32f   :  { %v2481_v20 = vpop.f32.mrf.mxu1 }
 0x330   :  { %v2593_v57 = vadd.f32 %v2592_v11, %v2480_v10  ;;  %v2482_v43 = vadd.f32 %v2481_v20, %v5107_v47  ;;  %v2594_v63 = vpop.f32.mrf.mxu0  ;;  %3135 = vmatprep.mubr.bf16.mxu0 %v2694_v51  ;;  %v2658_v22 = vmax.f32 %v2591_v18, 0.0 }
 0x331   :  { %v2485_v5 = vpop.f32.mrf.mxu1  ;;  %3136 = vmatmul.mubr.bf16.gmra.mxu0 %v2693_v12 }
 0x332   :  { %v2595_v42 = vadd.f32 %v2594_v63, %v2482_v43  ;;  %v2598_v19 = vpop.f32.mrf.mxu0  ;;  %v2661_v0 = vmax.f32 %v2593_v57, 0.0  ;;  %v2486_v25 = vadd.f32 %v2485_v5, %v5112_v33 }
 0x333   :  { %v2487_v44 = vpop.f32.mrf.mxu1 }
 0x334   :  { %v2662_v26 = vmax.f32 %v2595_v42, 0.0  ;;  %v2488_v45 = vadd.f32 %v2487_v44, %v5107_v47  ;;  %v2600_v24 = vpop.f32.mrf.mxu0  ;;  %v2697_v28 = vpack.c.bf16 %v2661_v0, %v2657_v46  ;;  %v2599_v31 = vadd.f32 %v2598_v19, %v2486_v25 }
 0x335   :  { %v2489_v62 = vpop.f32.mrf.mxu1 }
 0x336   :  { %v2698_v1 = vpack.c.bf16 %v2662_v26, %v2658_v22  ;;  %v2490_v2 = vadd.f32 %v2489_v62, %v5112_v33  ;;  %v2602_v3 = vpop.f32.mrf.mxu0  ;;  %v2601_v38 = vadd.f32 %v2600_v24, %v2488_v45  ;;  %v2665_v49 = vmax.f32 %v2599_v31, 0.0 }
 0x337   :  { %v2491_v29 = vpop.f32.mrf.mxu1 }
 0x338   :  { %v2603_v30 = vadd.f32 %v2602_v3, %v2490_v2  ;;  %v2492_v40 = vadd.f32 %v2491_v29, %v5107_v47  ;;  %3143 = vmatprep.mubr.bf16.mxu1 %v2698_v1  ;;  %v2604_v16 = vpop.f32.mrf.mxu0  ;;  %v2666_v15 = vmax.f32 %v2601_v38, 0.0 }
 0x339   :  { %3144 = vmatmul.mubr.bf16.vlgmr.msra.gmra.mxu1 %v2697_v28 }
 0x33a   :  { %v2605_v9 = vadd.f32 %v2604_v16, %v2492_v40  ;;  %v2669_v13 = vmax.f32 %v2603_v30, 0.0 }
 0x33c   :  { %v2670_v17 = vmax.f32 %v2605_v9, 0.0  ;;  %v2701_v50 = vpack.c.bf16 %v2669_v13, %v2665_v49 }
 0x33e   :  { %v2702_v23 = vpack.c.bf16 %v2670_v17, %v2666_v15 }
 0x340   :  { %3151 = vmatprep.mubr.bf16.mxu1 %v2702_v23 }
 0x341   :  { %3152 = vmatmul.mubr.bf16.gmra.mxu1 %v2701_v50 }
 0x389   :  { %v3483_v33 = vpop.f32.mrf.mxu1 }
 0x38b   :  { %v3484_v14 = vpop.f32.mrf.mxu1 }
 0x38c   :  { %v3485_v55 = vadd.f32 %v3484_v14, %v3483_v33 }
 0x38d   :  { %v3486_v39 = vpop.f32.mrf.mxu1 }
 0x38e   :  { %v3001_v51 = vadd.f32 %v3485_v55, %v5157_v54 }
 0x38f   :  { %v3487_v32 = vpop.f32.mrf.mxu1 }
 0x390   :  { %v3488_v10 = vadd.f32 %v3487_v32, %v3486_v39 }
 0x391   :  { %v3489_v61 = vpop.f32.mrf.mxu1 }
 0x392   :  { %v3004_v43 = vadd.f32 %v3488_v10, %v5157_v54 }
 0x393   :  { %v3490_v34 = vpop.f32.mrf.mxu1 }
 0x394   :  { %v3491_v63 = vadd.f32 %v3490_v34, %v3489_v61 }
 0x395   :  { %v3492_v47 = vpop.f32.mrf.mxu1 }
 0x396   :  { %v3009_v44 = vadd.f32 %v3491_v63, %v5157_v54 }
 0x397   :  { %v3493_v7 = vpop.f32.mrf.mxu1 }
 0x398   :  { %v3494_v22 = vadd.f32 %v3493_v7, %v3492_v47 }
 0x399   :  { %v3495_v35 = vpop.f32.mrf.mxu1 }
 0x39a   :  { %v3012_v62 = vadd.f32 %v3494_v22, %v5157_v54 }
 0x39b   :  { %v3496_v36 = vpop.f32.mrf.mxu1 }
 0x39c   :  { %v3497_v1 = vadd.f32 %v3496_v36, %v3495_v35 }
 0x39d   :  { %v3498_v21 = vpop.f32.mrf.mxu1 }
 0x39e   :  { %v3017_v30 = vadd.f32 %v3497_v1, %v5157_v54 }
 0x39f   :  { %v3499_v37 = vpop.f32.mrf.mxu1 }
 0x3a0   :  { %v3500_v40 = vadd.f32 %v3499_v37, %v3498_v21 }
 0x3a1   :  { %v3501_v52 = vpop.f32.mrf.mxu1 }
 0x3a2   :  { %v3020_v17 = vadd.f32 %v3500_v40, %v5157_v54 }
 0x3a3   :  { %v3502_v41 = vpop.f32.mrf.mxu1 }
 0x3a4   :  { %v3503_v49 = vadd.f32 %v3502_v41, %v3501_v52 }
 0x3a5   :  { %v3504_v53 = vpop.f32.mrf.mxu1 }
 0x3a6   :  { %v3025_v32 = vadd.f32 %v3503_v49, %v5157_v54 }
 0x3a7   :  { %v3505_v6 = vpop.f32.mrf.mxu1 }
 0x3a8   :  { %v3506_v61 = vadd.f32 %v3505_v6, %v3504_v53 }
 0x3a9   :  { %v5146_v48 = vpop.f32.mrf.mxu1 }
 0x3aa   :  { %v3028_v21 = vadd.f32 %v3506_v61, %v5157_v54 }
 0x3ab   :  { %v5148_v56 = vpop.f32.mrf.mxu1 }
 0x3ac   :  { %v3509_v37 = vadd.f32 %v5148_v56, %v5146_v48 }
 0x3ad   :  { %v5150_v4 = vpop.f32.mrf.mxu1 }
 0x3af   :  { %v5152_v8 = vpop.f32.mrf.mxu1 }
 0x3b1   :  { %v5159_v59 = vpop.f32.mrf.mxu1 }
 0x3b3   :  { %v5162_v18 = vpop.f32.mrf.mxu1 }
 0x3b5   :  { %v5168_v19 = vpop.f32.mrf.mxu1 }
 0x3b7   :  { %v3517_v46 = vpop.f32.mrf.mxu1 }
 0x3b9   :  { %v3519_v29 = vpop.f32.mrf.mxu1 }
 0x3bb   :  { %v3520_v13 = vpop.f32.mrf.mxu1 }
 0x3bd   :  { %v3522_v14 = vpop.f32.mrf.mxu1 }
 0x3bf   :  { %v3523_v35 = vpop.f32.mrf.mxu1 }
 0x3c1   :  { %v3525_v6 = vpop.f32.mrf.mxu1 }
 0x3c3   :  { %v3526_v10 = vpop.f32.mrf.mxu1 }
 0x3c9   :  { %v3547_v58 = vpop.f32.mrf.mxu0 }
 0x3cb   :  { %v3548_v60 = vpop.f32.mrf.mxu0 }
 0x3cc   :  { %v3549_v11 = vadd.f32 %v3548_v60, %v3547_v58  ;;  %v3033_v58 = vadd.f32 %v3509_v37, %v5157_v54  ;;  %v3512_v60 = vadd.f32 %v5152_v8, %v5150_v4 }
 0x3cd   :  { %v3550_v12 = vpop.f32.mrf.mxu0 }
 0x3ce   :  { %v3098_v20 = vadd.f32 %v3549_v11, %v3001_v51 }
 0x3cf   :  { %v3551_v57 = vpop.f32.mrf.mxu0 }
 0x3d0   :  { %3160 = vst [vmem:[%s5244_s8] sm:$0xff] %v3098_v20  ;;  %v3552_v27 = vadd.f32 %v3551_v57, %v3550_v12  ;;  %v3036_v12 = vadd.f32 %v3512_v60, %v5157_v54  ;;  %v3515_v20 = vadd.f32 %v5162_v18, %v5159_v59 }
 0x3d1   :  { %v3553_v5 = vpop.f32.mrf.mxu0 }
 0x3d2   :  { %v3101_v42 = vadd.f32 %v3552_v27, %v3004_v43  ;;  %v3528_v43 = vpop.f32.mrf.mxu1  ;;  %v3041_v27 = vadd.f32 %v3515_v20, %v5157_v54 }
 0x3d3   :  { %v3554_v0 = vpop.f32.mrf.mxu0 }
 0x3d4   :  { %3161 = vst [vmem:[%s5244_s8 + $0x8] sm:$0xff] %v3101_v42  ;;  %v3555_v26 = vadd.f32 %v3554_v0, %v3553_v5  ;;  %v3518_v5 = vadd.f32 %v3517_v46, %v5168_v19  ;;  %v3529_v18 = vpop.f32.mrf.mxu1 }
 0x3d5   :  { %v3556_v45 = vpop.f32.mrf.mxu0 }
 0x3d6   :  { %v3106_v24 = vadd.f32 %v3555_v26, %v3009_v44  ;;  %v3044_v22 = vadd.f32 %v3518_v5, %v5157_v54  ;;  %v3521_v26 = vadd.f32 %v3520_v13, %v3519_v29  ;;  %v3530_v13 = vadd.f32 %v3529_v18, %v3528_v43 }
 0x3d7   :  { %v3557_v25 = vpop.f32.mrf.mxu0 }
 0x3d8   :  { %3162 = vst [vmem:[%s5244_s8 + $0x10] sm:$0xff] %v3106_v24  ;;  %v3558_v2 = vadd.f32 %v3557_v25, %v3556_v45  ;;  %v3049_v46 = vadd.f32 %v3521_v26, %v5157_v54 }
 0x3d9   :  { %v3559_v3 = vpop.f32.mrf.mxu0 }
 0x3da   :  { %v3109_v28 = vadd.f32 %v3558_v2, %v3012_v62  ;;  %v3524_v62 = vadd.f32 %v3523_v35, %v3522_v14 }
 0x3db   :  { %v3560_v38 = vpop.f32.mrf.mxu0 }
 0x3dc   :  { %3163 = vst [vmem:[%s5244_s8 + $0x18] sm:$0xff] %v3109_v28  ;;  %v3561_v31 = vadd.f32 %v3560_v38, %v3559_v3  ;;  %v3052_v29 = vadd.f32 %v3524_v62, %v5157_v54  ;;  %v3527_v38 = vadd.f32 %v3526_v10, %v3525_v6 }
 0x3dd   :  { %v3562_v16 = vpop.f32.mrf.mxu0 }
 0x3de   :  { %v3114_v9 = vadd.f32 %v3561_v31, %v3017_v30 }
 0x3df   :  { %v3563_v15 = vpop.f32.mrf.mxu0 }
 0x3e0   :  { %3164 = vst [vmem:[%s5244_s8 + $0x20] sm:$0xff] %v3114_v9  ;;  %v3564_v23 = vadd.f32 %v3563_v15, %v3562_v16  ;;  %v3057_v9 = vadd.f32 %v3527_v38, %v5157_v54 }
 0x3e1   :  { %v3565_v50 = vpop.f32.mrf.mxu0 }
 0x3e2   :  { %v3117_v33 = vadd.f32 %v3564_v23, %v3020_v17 }
 0x3e3   :  { %v3566_v39 = vpop.f32.mrf.mxu0 }
 0x3e4   :  { %3165 = vst [vmem:[%s5244_s8 + $0x28] sm:$0xff] %v3117_v33  ;;  %v3567_v34 = vadd.f32 %v3566_v39, %v3565_v50  ;;  %v3060_v50 = vadd.f32 %v3530_v13, %v5157_v54 }
 0x3e5   :  { %v3568_v47 = vpop.f32.mrf.mxu0 }
 0x3e6   :  { %v3122_v7 = vadd.f32 %v3567_v34, %v3025_v32 }
 0x3e7   :  { %v3569_v36 = vpop.f32.mrf.mxu0 }
 0x3e8   :  { %3166 = vst [vmem:[%s5244_s8 + $0x30] sm:$0xff] %v3122_v7  ;;  %v3570_v52 = vadd.f32 %v3569_v36, %v3568_v47 }
 0x3e9   :  { %v3571_v41 = vpop.f32.mrf.mxu0 }
 0x3ea   :  { %v3125_v53 = vadd.f32 %v3570_v52, %v3028_v21 }
 0x3eb   :  { %v3572_v55 = vpop.f32.mrf.mxu0 }
 0x3ec   :  { %3167 = vst [vmem:[%s5244_s8 + $0x38] sm:$0xff] %v3125_v53  ;;  %v3573_v51 = vadd.f32 %v3572_v55, %v3571_v41 }
 0x3ed   :  { %v3574_v48 = vpop.f32.mrf.mxu0 }
 0x3ee   :  { %v3130_v56 = vadd.f32 %v3573_v51, %v3033_v58 }
 0x3ef   :  { %v3575_v11 = vpop.f32.mrf.mxu0 }
 0x3f0   :  { %3168 = vst [vmem:[%s5244_s8 + $0x40] sm:$0xff] %v3130_v56  ;;  %v3576_v57 = vadd.f32 %v3575_v11, %v3574_v48 }
 0x3f1   :  { %v3577_v4 = vpop.f32.mrf.mxu0 }
 0x3f2   :  { %v3133_v8 = vadd.f32 %v3576_v57, %v3036_v12 }
 0x3f3   :  { %v3578_v63 = vpop.f32.mrf.mxu0 }
 0x3f4   :  { %3169 = vst [vmem:[%s5244_s8 + $0x48] sm:$0xff] %v3133_v8  ;;  %v3579_v42 = vadd.f32 %v3578_v63, %v3577_v4 }
 0x3f5   :  { %v3580_v0 = vpop.f32.mrf.mxu0 }
 0x3f6   :  { %v3138_v59 = vadd.f32 %v3579_v42, %v3041_v27 }
 0x3f7   :  { %v3581_v44 = vpop.f32.mrf.mxu0 }
 0x3f8   :  { %3170 = vst [vmem:[%s5244_s8 + $0x50] sm:$0xff] %v3138_v59  ;;  %v3582_v45 = vadd.f32 %v3581_v44, %v3580_v0 }
 0x3f9   :  { %v3583_v24 = vpop.f32.mrf.mxu1 }
 0x3fa   :  { %v3141_v25 = vadd.f32 %v3582_v45, %v3044_v22 }
 0x3fb   :  { %v3584_v19 = vpop.f32.mrf.mxu1 }
 0x3fc   :  { %3171 = vst [vmem:[%s5244_s8 + $0x58] sm:$0xff] %v3141_v25  ;;  %v3585_v1 = vadd.f32 %v3584_v19, %v3583_v24 }
 0x3fd   :  { %v3586_v2 = vpop.f32.mrf.mxu1 }
 0x3fe   :  { %v3146_v3 = vadd.f32 %v3585_v1, %v3049_v46 }
 0x3ff   :  { %v3587_v28 = vpop.f32.mrf.mxu1 }
 0x400   :  { %3172 = vst [vmem:[%s5244_s8 + $0x60] sm:$0xff] %v3146_v3  ;;  %v3588_v30 = vadd.f32 %v3587_v28, %v3586_v2 }
 0x401   :  { %v3589_v40 = vpop.f32.mrf.mxu1 }
 0x402   :  { %v3149_v31 = vadd.f32 %v3588_v30, %v3052_v29 }
 0x403   :  { %v3590_v16 = vpop.f32.mrf.mxu1 }
 0x404   :  { %3173 = vst [vmem:[%s5244_s8 + $0x68] sm:$0xff] %v3149_v31  ;;  %v3591_v15 = vadd.f32 %v3590_v16, %v3589_v40 }
 0x405   :  { %v3592_v17 = vpop.f32.mrf.mxu1 }
 0x406   :  { %v3154_v49 = vadd.f32 %v3591_v15, %v3057_v9 }
 0x407   :  { %v3593_v23 = vpop.f32.mrf.mxu1 }
 0x408   :  { %3174 = vst [vmem:[%s5244_s8 + $0x70] sm:$0xff] %v3154_v49  ;;  %v3594_v33 = vadd.f32 %v3593_v23, %v3592_v17 }
 0x40a   :  { %v3157_v14 = vadd.f32 %v3594_v33, %v3060_v50 }
 0x40c   :  { %3175 = vst [vmem:[%s5244_s8 + $0x78] sm:$0xff] %v3157_v14 }
 0x40d   :  { %3180 = vsyncpa [#allocation3], 1 }
 0x40e   :  { %3181 = vsyncpa [#allocation5], 1 }

</bundles_post_ra>
